<compile_context>
chip_gen: v6e
topology: v6e:2x2x1
jax: 0.10.0
libtpu: 0.0.40
codegen_flags: <defaults>
</compile_context>

<pallas_src>
import numpy as np
import jax
import jax.numpy as jnp
from jax.experimental import pallas as pl
from jax.experimental.pallas import tpu as pltpu


def _gru_model_kernel(feats_ref, wcomb_ref, wh_ref, slab_ref, scal_ref, y_ref):
    # feats_ref : (S*B, C)   time-major flat features (row t*B + b)         VMEM
    # wcomb_ref : (C, 3d)    fused transfer + input-gate weights            VMEM
    # wh_ref    : (d, 3d)    concatenated hidden-gate weights [hr|hz|hn]    VMEM
    # slab_ref  : (2, 3d)    row0 = fused input bias, row1 = [b_hn|w_attn|w_fc]
    # scal_ref  : (2,)       [b_attn, b_fc]                                 SMEM
    # y_ref     : (B, 1)                                                    VMEM
    SB = feats_ref.shape[0]
    B = y_ref.shape[0]
    S = SB // B
    d = wh_ref.shape[0]

    # ---- hoisted input-side work (independent of h => off the serial path) ----
    gates_x = (jnp.dot(feats_ref[...], wcomb_ref[...],
                       preferred_element_type=jnp.float32)
               + slab_ref[0:1, :])                            # (S*B, 3d)
    # One-time lane splits so per-step slicing is row-only.
    gxr = gates_x[:, :d]
    gxz = gates_x[:, d:2 * d]
    gxn = gates_x[:, 2 * d:]

    w_h = wh_ref[...]                                         # (d, 3d)
    row1 = slab_ref[1:2, :]                                   # (1, 3d)
    bhn = jnp.broadcast_to(row1[:, :d], (B, d))               # broadcasts hoisted once
    w_attn = jnp.broadcast_to(row1[:, d:2 * d], (B, d))
    w_fc = jnp.broadcast_to(row1[:, 2 * d:], (B, d))
    b_attn = scal_ref[0]
    b_fc = scal_ref[1]

    # ---- serial recurrence (fully unrolled, S static) with fused online-softmax pooling ----
    h = jnp.zeros((B, d), dtype=jnp.float32)
    m = l = acc = None
    for t in range(S):
        lo = t * B
        gh = jnp.dot(h, w_h, preferred_element_type=jnp.float32)       # one MXU push / step
        r = jax.nn.sigmoid(gxr[lo:lo + B, :] + gh[:, :d])
        z = jax.nn.sigmoid(gxz[lo:lo + B, :] + gh[:, d:2 * d])
        n = jnp.tanh(gxn[lo:lo + B, :] + r * (gh[:, 2 * d:] + bhn))
        h = n + z * (h - n)                                             # == (1-z)*n + z*h

        # Online-softmax attention pooling (depends on h, but h does not depend on it
        # -> off the critical h->h chain, hidden by the scheduler).
        score = jnp.sum(h * w_attn, axis=-1, keepdims=True) + b_attn    # (B, 1)
        if t == 0:
            m = score
            l = jnp.ones_like(score)                                    # exp(score - m) == 1
            acc = h
        else:
            m_new = jnp.maximum(m, score)
            a = jnp.exp(m - m_new)
            e = jnp.exp(score - m_new)
            l = a * l + e
            acc = a * acc + e * h
            m = m_new

    pooled = acc / l                                                    # (B, d)
    # Final linear (d -> 1) as VPU multiply + reduce.
    y_ref[...] = jnp.sum(pooled * w_fc, axis=-1, keepdims=True) + b_fc  # (B, 1)


@jax.jit
def gru_forward(feats, params):
    B, S, C = feats.shape
    d = params["w_tr"].shape[1]

    # Time-major flat features: row t*B + b (one-off XLA-side transpose).
    feats_tb = jnp.swapaxes(feats, 0, 1).reshape(S * B, C)

    # One-off weight/bias fusion in the wrapper (exact algebra).
    w_i_cat = jnp.concatenate([params["w_ir"], params["w_iz"], params["w_in"]], axis=1)  # (d, 3d)
    w_h_cat = jnp.concatenate([params["w_hr"], params["w_hz"], params["w_hn"]], axis=1)  # (d, 3d)
    b_x_cat = jnp.concatenate([params["b_ir"] + params["b_hr"],
                               params["b_iz"] + params["b_hz"],
                               params["b_in"]], axis=1)                                  # (1, 3d)
    w_comb = params["w_tr"] @ w_i_cat                        # (C, 3d): transfer folded into gates
    b_comb = params["b_tr"] @ w_i_cat + b_x_cat              # (1, 3d)

    # Pack remaining small vectors into one slab, scalars into SMEM.
    slab = jnp.concatenate(
        [b_comb,
         jnp.concatenate([params["b_hn"],
                          params["w_attn"].reshape(1, d),
                          params["w_fc"].reshape(1, d)], axis=1)],
        axis=0)                                              # (2, 3d)
    scalars = jnp.concatenate([params["b_attn"].reshape(1),
                               params["b_fc"].reshape(1)])   # (2,)

    return pl.pallas_call(
        _gru_model_kernel,
        out_shape=jax.ShapeDtypeStruct((B, 1), jnp.float32),
        in_specs=[pl.BlockSpec(memory_space=pltpu.MemorySpace.VMEM),   # feats
                  pl.BlockSpec(memory_space=pltpu.MemorySpace.VMEM),   # w_comb
                  pl.BlockSpec(memory_space=pltpu.MemorySpace.VMEM),   # w_h
                  pl.BlockSpec(memory_space=pltpu.MemorySpace.VMEM),   # slab
                  pl.BlockSpec(memory_space=pltpu.MemorySpace.SMEM)],  # scalars
        out_specs=pl.BlockSpec(memory_space=pltpu.MemorySpace.VMEM),
    )(feats_tb, w_comb, w_h_cat, slab, scalars)


def init_params(key, num_classes=29, d_model=32):
    """Deterministic init mimicking PyTorch's uniform(-1/sqrt(fan_in), 1/sqrt(fan_in))."""
    C, d = num_classes, d_model
    ks = jax.random.split(key, 16)

    def u(k, shape, fan_in):
        b = 1.0 / np.sqrt(fan_in)
        return jax.random.uniform(k, shape, jnp.float32, -b, b)

    return {
        "w_tr": u(ks[0], (C, d), C), "b_tr": u(ks[1], (1, d), C),
        "w_ir": u(ks[2], (d, d), d), "w_iz": u(ks[3], (d, d), d), "w_in": u(ks[4], (d, d), d),
        "b_ir": u(ks[5], (1, d), d), "b_iz": u(ks[6], (1, d), d), "b_in": u(ks[7], (1, d), d),
        "w_hr": u(ks[8], (d, d), d), "w_hz": u(ks[9], (d, d), d), "w_hn": u(ks[10], (d, d), d),
        "b_hr": u(ks[11], (1, d), d), "b_hz": u(ks[12], (1, d), d), "b_hn": u(ks[13], (1, d), d),
        "w_attn": u(ks[14], (d, 1), d), "b_attn": jnp.zeros((1, 1), jnp.float32),
        "w_fc": u(ks[15], (d, 1), d), "b_fc": jnp.zeros((1, 1), jnp.float32),
    }


def reference_forward(feats, p):
    """Pure-JAX reference matching the PyTorch module semantics."""
    x = feats @ p["w_tr"] + p["b_tr"]                    # (B, S, d)
    B, S, d = x.shape

    def step(h, x_t):
        r = jax.nn.sigmoid(x_t @ p["w_ir"] + p["b_ir"] + h @ p["w_hr"] + p["b_hr"])
        z = jax.nn.sigmoid(x_t @ p["w_iz"] + p["b_iz"] + h @ p["w_hz"] + p["b_hz"])
        n = jnp.tanh(x_t @ p["w_in"] + p["b_in"] + r * (h @ p["w_hn"] + p["b_hn"]))
        h_new = (1.0 - z) * n + z * h
        return h_new, h_new

    h0 = jnp.zeros((B, d), jnp.float32)
    _, outs = jax.lax.scan(step, h0, jnp.swapaxes(x, 0, 1))
    out = jnp.swapaxes(outs, 0, 1)                       # (B, S, d)
    scores = out @ p["w_attn"] + p["b_attn"]             # (B, S, 1)
    attn = jax.nn.softmax(scores, axis=1)
    pooled = jnp.sum(attn * out, axis=1)                 # (B, d)
    return pooled @ p["w_fc"] + p["b_fc"]                # (B, 1)


if __name__ == "__main__":
    key = jax.random.PRNGKey(0)
    k_param, k_feat = jax.random.split(key)

    B, S, C, d_model = 2, 8, 29, 32  # nnlqp branch: num_classes = 29
    params = init_params(k_param, num_classes=C, d_model=d_model)
    feats = jax.random.normal(k_feat, (B, S, C), jnp.float32)

    y = gru_forward(feats, params)
    jax.block_until_ready(y)

    y_ref = reference_forward(feats, params)
    np.testing.assert_allclose(np.asarray(y), np.asarray(y_ref), rtol=1e-4, atol=1e-4)

    print("KERNEL_OK")
</pallas_src>

<mosaic_0001>
module attributes {stable_mosaic.version = 11 : i64} {
  func.func @_gru_model_kernel(%arg0: memref<16x29xf32, #tpu.memory_space<vmem>>, %arg1: memref<29x96xf32, #tpu.memory_space<vmem>>, %arg2: memref<32x96xf32, #tpu.memory_space<vmem>>, %arg3: memref<2x96xf32, #tpu.memory_space<vmem>>, %arg4: memref<2xf32, #tpu.memory_space<smem>>, %arg5: memref<2x1xf32, #tpu.memory_space<vmem>>) attributes {dimension_semantics = [], scalar_prefetch = 0 : i64, scratch_operands = 0 : i64, tpu.core_type = #tpu.core_type<tc>} {
    %c0 = arith.constant 0 : index
    %c0_0 = arith.constant 0 : index
    %0 = vector.load %arg0[%c0, %c0_0] : memref<16x29xf32, #tpu.memory_space<vmem>>, vector<16x29xf32>
    %c0_1 = arith.constant 0 : index
    %c0_2 = arith.constant 0 : index
    %1 = vector.load %arg1[%c0_1, %c0_2] : memref<29x96xf32, #tpu.memory_space<vmem>>, vector<29x96xf32>
    %cst = arith.constant dense<0.000000e+00> : vector<16x96xf32>
    %2 = tpu.matmul %0, %1, %cst {dimension_numbers = #tpu.dot_dimension_numbers<[1], [0], [0], [1], [0, 0, 1, 1], [], []>} : vector<16x29xf32>, vector<29x96xf32>, vector<16x96xf32> -> vector<16x96xf32>
    %c0_3 = arith.constant 0 : index
    %c0_4 = arith.constant 0 : index
    %3 = vector.load %arg3[%c0_3, %c0_4] : memref<2x96xf32, #tpu.memory_space<vmem>>, vector<1x96xf32>
    %4 = vector.broadcast %3 : vector<1x96xf32> to vector<16x96xf32>
    %5 = arith.addf %2, %4 : vector<16x96xf32>
    %6 = vector.extract_strided_slice %5 {offsets = [0, 0], sizes = [16, 32], strides = [1, 1]} : vector<16x96xf32> to vector<16x32xf32>
    %7 = vector.extract_strided_slice %5 {offsets = [0, 32], sizes = [16, 32], strides = [1, 1]} : vector<16x96xf32> to vector<16x32xf32>
    %8 = vector.extract_strided_slice %5 {offsets = [0, 64], sizes = [16, 32], strides = [1, 1]} : vector<16x96xf32> to vector<16x32xf32>
    %c0_5 = arith.constant 0 : index
    %c0_6 = arith.constant 0 : index
    %9 = vector.load %arg2[%c0_5, %c0_6] : memref<32x96xf32, #tpu.memory_space<vmem>>, vector<32x96xf32>
    %c1 = arith.constant 1 : index
    %c0_7 = arith.constant 0 : index
    %10 = vector.load %arg3[%c1, %c0_7] : memref<2x96xf32, #tpu.memory_space<vmem>>, vector<1x96xf32>
    %11 = vector.extract_strided_slice %10 {offsets = [0, 0], sizes = [1, 32], strides = [1, 1]} : vector<1x96xf32> to vector<1x32xf32>
    %12 = vector.shape_cast %11 : vector<1x32xf32> to vector<1x32xf32>
    %13 = vector.broadcast %12 : vector<1x32xf32> to vector<2x32xf32>
    %14 = vector.extract_strided_slice %10 {offsets = [0, 32], sizes = [1, 32], strides = [1, 1]} : vector<1x96xf32> to vector<1x32xf32>
    %15 = vector.shape_cast %14 : vector<1x32xf32> to vector<1x32xf32>
    %16 = vector.broadcast %15 : vector<1x32xf32> to vector<2x32xf32>
    %17 = vector.extract_strided_slice %10 {offsets = [0, 64], sizes = [1, 32], strides = [1, 1]} : vector<1x96xf32> to vector<1x32xf32>
    %18 = vector.shape_cast %17 : vector<1x32xf32> to vector<1x32xf32>
    %19 = vector.broadcast %18 : vector<1x32xf32> to vector<2x32xf32>
    %c0_8 = arith.constant 0 : index
    %20 = memref.load %arg4[%c0_8] : memref<2xf32, #tpu.memory_space<smem>>
    %c1_9 = arith.constant 1 : index
    %21 = memref.load %arg4[%c1_9] : memref<2xf32, #tpu.memory_space<smem>>
    %cst_10 = arith.constant 0.000000e+00 : f32
    %22 = vector.broadcast %cst_10 : f32 to vector<2x32xf32>
    %cst_11 = arith.constant dense<0.000000e+00> : vector<2x96xf32>
    %23 = tpu.matmul %22, %9, %cst_11 {dimension_numbers = #tpu.dot_dimension_numbers<[1], [0], [0], [1], [0, 0, 1, 1], [], []>} : vector<2x32xf32>, vector<32x96xf32>, vector<2x96xf32> -> vector<2x96xf32>
    %24 = vector.extract_strided_slice %6 {offsets = [0, 0], sizes = [2, 32], strides = [1, 1]} : vector<16x32xf32> to vector<2x32xf32>
    %25 = vector.extract_strided_slice %23 {offsets = [0, 0], sizes = [2, 32], strides = [1, 1]} : vector<2x96xf32> to vector<2x32xf32>
    %26 = arith.addf %24, %25 : vector<2x32xf32>
    %27 = arith.negf %26 : vector<2x32xf32>
    %28 = math.exp %27 : vector<2x32xf32>
    %cst_12 = arith.constant 1.000000e+00 : f32
    %29 = vector.broadcast %cst_12 : f32 to vector<2x32xf32>
    %30 = arith.addf %29, %28 : vector<2x32xf32>
    %31 = arith.divf %29, %30 : vector<2x32xf32>
    %32 = vector.extract_strided_slice %7 {offsets = [0, 0], sizes = [2, 32], strides = [1, 1]} : vector<16x32xf32> to vector<2x32xf32>
    %33 = vector.extract_strided_slice %23 {offsets = [0, 32], sizes = [2, 32], strides = [1, 1]} : vector<2x96xf32> to vector<2x32xf32>
    %34 = arith.addf %32, %33 : vector<2x32xf32>
    %35 = arith.negf %34 : vector<2x32xf32>
    %36 = math.exp %35 : vector<2x32xf32>
    %cst_13 = arith.constant 1.000000e+00 : f32
    %37 = vector.broadcast %cst_13 : f32 to vector<2x32xf32>
    %38 = arith.addf %37, %36 : vector<2x32xf32>
    %39 = arith.divf %37, %38 : vector<2x32xf32>
    %40 = vector.extract_strided_slice %8 {offsets = [0, 0], sizes = [2, 32], strides = [1, 1]} : vector<16x32xf32> to vector<2x32xf32>
    %41 = vector.extract_strided_slice %23 {offsets = [0, 64], sizes = [2, 32], strides = [1, 1]} : vector<2x96xf32> to vector<2x32xf32>
    %42 = arith.addf %41, %13 : vector<2x32xf32>
    %43 = arith.mulf %31, %42 : vector<2x32xf32>
    %44 = arith.addf %40, %43 : vector<2x32xf32>
    %45 = math.tanh %44 : vector<2x32xf32>
    %46 = arith.subf %22, %45 : vector<2x32xf32>
    %47 = arith.mulf %39, %46 : vector<2x32xf32>
    %48 = arith.addf %45, %47 : vector<2x32xf32>
    %49 = arith.mulf %48, %16 : vector<2x32xf32>
    %cst_14 = arith.constant dense<0.000000e+00> : vector<2xf32>
    %50 = vector.multi_reduction <add>, %49, %cst_14 [1] : vector<2x32xf32> to vector<2xf32>
    %51 = vector.shape_cast %50 : vector<2xf32> to vector<2x1xf32>
    %52 = vector.broadcast %20 : f32 to vector<2x1xf32>
    %53 = arith.addf %51, %52 : vector<2x1xf32>
    %cst_15 = arith.constant 1.000000e+00 : f32
    %54 = vector.broadcast %cst_15 : f32 to vector<2x1xf32>
    %cst_16 = arith.constant dense<0.000000e+00> : vector<2x96xf32>
    %55 = tpu.matmul %48, %9, %cst_16 {dimension_numbers = #tpu.dot_dimension_numbers<[1], [0], [0], [1], [0, 0, 1, 1], [], []>} : vector<2x32xf32>, vector<32x96xf32>, vector<2x96xf32> -> vector<2x96xf32>
    %56 = vector.extract_strided_slice %6 {offsets = [2, 0], sizes = [2, 32], strides = [1, 1]} : vector<16x32xf32> to vector<2x32xf32>
    %57 = vector.extract_strided_slice %55 {offsets = [0, 0], sizes = [2, 32], strides = [1, 1]} : vector<2x96xf32> to vector<2x32xf32>
    %58 = arith.addf %56, %57 : vector<2x32xf32>
    %59 = arith.negf %58 : vector<2x32xf32>
    %60 = math.exp %59 : vector<2x32xf32>
    %cst_17 = arith.constant 1.000000e+00 : f32
    %61 = vector.broadcast %cst_17 : f32 to vector<2x32xf32>
    %62 = arith.addf %61, %60 : vector<2x32xf32>
    %63 = arith.divf %61, %62 : vector<2x32xf32>
    %64 = vector.extract_strided_slice %7 {offsets = [2, 0], sizes = [2, 32], strides = [1, 1]} : vector<16x32xf32> to vector<2x32xf32>
    %65 = vector.extract_strided_slice %55 {offsets = [0, 32], sizes = [2, 32], strides = [1, 1]} : vector<2x96xf32> to vector<2x32xf32>
    %66 = arith.addf %64, %65 : vector<2x32xf32>
    %67 = arith.negf %66 : vector<2x32xf32>
    %68 = math.exp %67 : vector<2x32xf32>
    %cst_18 = arith.constant 1.000000e+00 : f32
    %69 = vector.broadcast %cst_18 : f32 to vector<2x32xf32>
    %70 = arith.addf %69, %68 : vector<2x32xf32>
    %71 = arith.divf %69, %70 : vector<2x32xf32>
    %72 = vector.extract_strided_slice %8 {offsets = [2, 0], sizes = [2, 32], strides = [1, 1]} : vector<16x32xf32> to vector<2x32xf32>
    %73 = vector.extract_strided_slice %55 {offsets = [0, 64], sizes = [2, 32], strides = [1, 1]} : vector<2x96xf32> to vector<2x32xf32>
    %74 = arith.addf %73, %13 : vector<2x32xf32>
    %75 = arith.mulf %63, %74 : vector<2x32xf32>
    %76 = arith.addf %72, %75 : vector<2x32xf32>
    %77 = math.tanh %76 : vector<2x32xf32>
    %78 = arith.subf %48, %77 : vector<2x32xf32>
    %79 = arith.mulf %71, %78 : vector<2x32xf32>
    %80 = arith.addf %77, %79 : vector<2x32xf32>
    %81 = arith.mulf %80, %16 : vector<2x32xf32>
    %cst_19 = arith.constant dense<0.000000e+00> : vector<2xf32>
    %82 = vector.multi_reduction <add>, %81, %cst_19 [1] : vector<2x32xf32> to vector<2xf32>
    %83 = vector.shape_cast %82 : vector<2xf32> to vector<2x1xf32>
    %84 = vector.broadcast %20 : f32 to vector<2x1xf32>
    %85 = arith.addf %83, %84 : vector<2x1xf32>
    %86 = arith.maximumf %53, %85 : vector<2x1xf32>
    %87 = arith.subf %53, %86 : vector<2x1xf32>
    %88 = math.exp %87 : vector<2x1xf32>
    %89 = arith.subf %85, %86 : vector<2x1xf32>
    %90 = math.exp %89 : vector<2x1xf32>
    %91 = arith.mulf %88, %54 : vector<2x1xf32>
    %92 = arith.addf %91, %90 : vector<2x1xf32>
    %93 = vector.broadcast %88 : vector<2x1xf32> to vector<2x32xf32>
    %94 = arith.mulf %93, %48 : vector<2x32xf32>
    %95 = vector.broadcast %90 : vector<2x1xf32> to vector<2x32xf32>
    %96 = arith.mulf %95, %80 : vector<2x32xf32>
    %97 = arith.addf %94, %96 : vector<2x32xf32>
    %cst_20 = arith.constant dense<0.000000e+00> : vector<2x96xf32>
    %98 = tpu.matmul %80, %9, %cst_20 {dimension_numbers = #tpu.dot_dimension_numbers<[1], [0], [0], [1], [0, 0, 1, 1], [], []>} : vector<2x32xf32>, vector<32x96xf32>, vector<2x96xf32> -> vector<2x96xf32>
    %99 = vector.extract_strided_slice %6 {offsets = [4, 0], sizes = [2, 32], strides = [1, 1]} : vector<16x32xf32> to vector<2x32xf32>
    %100 = vector.extract_strided_slice %98 {offsets = [0, 0], sizes = [2, 32], strides = [1, 1]} : vector<2x96xf32> to vector<2x32xf32>
    %101 = arith.addf %99, %100 : vector<2x32xf32>
    %102 = arith.negf %101 : vector<2x32xf32>
    %103 = math.exp %102 : vector<2x32xf32>
    %cst_21 = arith.constant 1.000000e+00 : f32
    %104 = vector.broadcast %cst_21 : f32 to vector<2x32xf32>
    %105 = arith.addf %104, %103 : vector<2x32xf32>
    %106 = arith.divf %104, %105 : vector<2x32xf32>
    %107 = vector.extract_strided_slice %7 {offsets = [4, 0], sizes = [2, 32], strides = [1, 1]} : vector<16x32xf32> to vector<2x32xf32>
    %108 = vector.extract_strided_slice %98 {offsets = [0, 32], sizes = [2, 32], strides = [1, 1]} : vector<2x96xf32> to vector<2x32xf32>
    %109 = arith.addf %107, %108 : vector<2x32xf32>
    %110 = arith.negf %109 : vector<2x32xf32>
    %111 = math.exp %110 : vector<2x32xf32>
    %cst_22 = arith.constant 1.000000e+00 : f32
    %112 = vector.broadcast %cst_22 : f32 to vector<2x32xf32>
    %113 = arith.addf %112, %111 : vector<2x32xf32>
    %114 = arith.divf %112, %113 : vector<2x32xf32>
    %115 = vector.extract_strided_slice %8 {offsets = [4, 0], sizes = [2, 32], strides = [1, 1]} : vector<16x32xf32> to vector<2x32xf32>
    %116 = vector.extract_strided_slice %98 {offsets = [0, 64], sizes = [2, 32], strides = [1, 1]} : vector<2x96xf32> to vector<2x32xf32>
    %117 = arith.addf %116, %13 : vector<2x32xf32>
    %118 = arith.mulf %106, %117 : vector<2x32xf32>
    %119 = arith.addf %115, %118 : vector<2x32xf32>
    %120 = math.tanh %119 : vector<2x32xf32>
    %121 = arith.subf %80, %120 : vector<2x32xf32>
    %122 = arith.mulf %114, %121 : vector<2x32xf32>
    %123 = arith.addf %120, %122 : vector<2x32xf32>
    %124 = arith.mulf %123, %16 : vector<2x32xf32>
    %cst_23 = arith.constant dense<0.000000e+00> : vector<2xf32>
    %125 = vector.multi_reduction <add>, %124, %cst_23 [1] : vector<2x32xf32> to vector<2xf32>
    %126 = vector.shape_cast %125 : vector<2xf32> to vector<2x1xf32>
    %127 = vector.broadcast %20 : f32 to vector<2x1xf32>
    %128 = arith.addf %126, %127 : vector<2x1xf32>
    %129 = arith.maximumf %86, %128 : vector<2x1xf32>
    %130 = arith.subf %86, %129 : vector<2x1xf32>
    %131 = math.exp %130 : vector<2x1xf32>
    %132 = arith.subf %128, %129 : vector<2x1xf32>
    %133 = math.exp %132 : vector<2x1xf32>
    %134 = arith.mulf %131, %92 : vector<2x1xf32>
    %135 = arith.addf %134, %133 : vector<2x1xf32>
    %136 = vector.broadcast %131 : vector<2x1xf32> to vector<2x32xf32>
    %137 = arith.mulf %136, %97 : vector<2x32xf32>
    %138 = vector.broadcast %133 : vector<2x1xf32> to vector<2x32xf32>
    %139 = arith.mulf %138, %123 : vector<2x32xf32>
    %140 = arith.addf %137, %139 : vector<2x32xf32>
    %cst_24 = arith.constant dense<0.000000e+00> : vector<2x96xf32>
    %141 = tpu.matmul %123, %9, %cst_24 {dimension_numbers = #tpu.dot_dimension_numbers<[1], [0], [0], [1], [0, 0, 1, 1], [], []>} : vector<2x32xf32>, vector<32x96xf32>, vector<2x96xf32> -> vector<2x96xf32>
    %142 = vector.extract_strided_slice %6 {offsets = [6, 0], sizes = [2, 32], strides = [1, 1]} : vector<16x32xf32> to vector<2x32xf32>
    %143 = vector.extract_strided_slice %141 {offsets = [0, 0], sizes = [2, 32], strides = [1, 1]} : vector<2x96xf32> to vector<2x32xf32>
    %144 = arith.addf %142, %143 : vector<2x32xf32>
    %145 = arith.negf %144 : vector<2x32xf32>
    %146 = math.exp %145 : vector<2x32xf32>
    %cst_25 = arith.constant 1.000000e+00 : f32
    %147 = vector.broadcast %cst_25 : f32 to vector<2x32xf32>
    %148 = arith.addf %147, %146 : vector<2x32xf32>
    %149 = arith.divf %147, %148 : vector<2x32xf32>
    %150 = vector.extract_strided_slice %7 {offsets = [6, 0], sizes = [2, 32], strides = [1, 1]} : vector<16x32xf32> to vector<2x32xf32>
    %151 = vector.extract_strided_slice %141 {offsets = [0, 32], sizes = [2, 32], strides = [1, 1]} : vector<2x96xf32> to vector<2x32xf32>
    %152 = arith.addf %150, %151 : vector<2x32xf32>
    %153 = arith.negf %152 : vector<2x32xf32>
    %154 = math.exp %153 : vector<2x32xf32>
    %cst_26 = arith.constant 1.000000e+00 : f32
    %155 = vector.broadcast %cst_26 : f32 to vector<2x32xf32>
    %156 = arith.addf %155, %154 : vector<2x32xf32>
    %157 = arith.divf %155, %156 : vector<2x32xf32>
    %158 = vector.extract_strided_slice %8 {offsets = [6, 0], sizes = [2, 32], strides = [1, 1]} : vector<16x32xf32> to vector<2x32xf32>
    %159 = vector.extract_strided_slice %141 {offsets = [0, 64], sizes = [2, 32], strides = [1, 1]} : vector<2x96xf32> to vector<2x32xf32>
    %160 = arith.addf %159, %13 : vector<2x32xf32>
    %161 = arith.mulf %149, %160 : vector<2x32xf32>
    %162 = arith.addf %158, %161 : vector<2x32xf32>
    %163 = math.tanh %162 : vector<2x32xf32>
    %164 = arith.subf %123, %163 : vector<2x32xf32>
    %165 = arith.mulf %157, %164 : vector<2x32xf32>
    %166 = arith.addf %163, %165 : vector<2x32xf32>
    %167 = arith.mulf %166, %16 : vector<2x32xf32>
    %cst_27 = arith.constant dense<0.000000e+00> : vector<2xf32>
    %168 = vector.multi_reduction <add>, %167, %cst_27 [1] : vector<2x32xf32> to vector<2xf32>
    %169 = vector.shape_cast %168 : vector<2xf32> to vector<2x1xf32>
    %170 = vector.broadcast %20 : f32 to vector<2x1xf32>
    %171 = arith.addf %169, %170 : vector<2x1xf32>
    %172 = arith.maximumf %129, %171 : vector<2x1xf32>
    %173 = arith.subf %129, %172 : vector<2x1xf32>
    %174 = math.exp %173 : vector<2x1xf32>
    %175 = arith.subf %171, %172 : vector<2x1xf32>
    %176 = math.exp %175 : vector<2x1xf32>
    %177 = arith.mulf %174, %135 : vector<2x1xf32>
    %178 = arith.addf %177, %176 : vector<2x1xf32>
    %179 = vector.broadcast %174 : vector<2x1xf32> to vector<2x32xf32>
    %180 = arith.mulf %179, %140 : vector<2x32xf32>
    %181 = vector.broadcast %176 : vector<2x1xf32> to vector<2x32xf32>
    %182 = arith.mulf %181, %166 : vector<2x32xf32>
    %183 = arith.addf %180, %182 : vector<2x32xf32>
    %cst_28 = arith.constant dense<0.000000e+00> : vector<2x96xf32>
    %184 = tpu.matmul %166, %9, %cst_28 {dimension_numbers = #tpu.dot_dimension_numbers<[1], [0], [0], [1], [0, 0, 1, 1], [], []>} : vector<2x32xf32>, vector<32x96xf32>, vector<2x96xf32> -> vector<2x96xf32>
    %185 = vector.extract_strided_slice %6 {offsets = [8, 0], sizes = [2, 32], strides = [1, 1]} : vector<16x32xf32> to vector<2x32xf32>
    %186 = vector.extract_strided_slice %184 {offsets = [0, 0], sizes = [2, 32], strides = [1, 1]} : vector<2x96xf32> to vector<2x32xf32>
    %187 = arith.addf %185, %186 : vector<2x32xf32>
    %188 = arith.negf %187 : vector<2x32xf32>
    %189 = math.exp %188 : vector<2x32xf32>
    %cst_29 = arith.constant 1.000000e+00 : f32
    %190 = vector.broadcast %cst_29 : f32 to vector<2x32xf32>
    %191 = arith.addf %190, %189 : vector<2x32xf32>
    %192 = arith.divf %190, %191 : vector<2x32xf32>
    %193 = vector.extract_strided_slice %7 {offsets = [8, 0], sizes = [2, 32], strides = [1, 1]} : vector<16x32xf32> to vector<2x32xf32>
    %194 = vector.extract_strided_slice %184 {offsets = [0, 32], sizes = [2, 32], strides = [1, 1]} : vector<2x96xf32> to vector<2x32xf32>
    %195 = arith.addf %193, %194 : vector<2x32xf32>
    %196 = arith.negf %195 : vector<2x32xf32>
    %197 = math.exp %196 : vector<2x32xf32>
    %cst_30 = arith.constant 1.000000e+00 : f32
    %198 = vector.broadcast %cst_30 : f32 to vector<2x32xf32>
    %199 = arith.addf %198, %197 : vector<2x32xf32>
    %200 = arith.divf %198, %199 : vector<2x32xf32>
    %201 = vector.extract_strided_slice %8 {offsets = [8, 0], sizes = [2, 32], strides = [1, 1]} : vector<16x32xf32> to vector<2x32xf32>
    %202 = vector.extract_strided_slice %184 {offsets = [0, 64], sizes = [2, 32], strides = [1, 1]} : vector<2x96xf32> to vector<2x32xf32>
    %203 = arith.addf %202, %13 : vector<2x32xf32>
    %204 = arith.mulf %192, %203 : vector<2x32xf32>
    %205 = arith.addf %201, %204 : vector<2x32xf32>
    %206 = math.tanh %205 : vector<2x32xf32>
    %207 = arith.subf %166, %206 : vector<2x32xf32>
    %208 = arith.mulf %200, %207 : vector<2x32xf32>
    %209 = arith.addf %206, %208 : vector<2x32xf32>
    %210 = arith.mulf %209, %16 : vector<2x32xf32>
    %cst_31 = arith.constant dense<0.000000e+00> : vector<2xf32>
    %211 = vector.multi_reduction <add>, %210, %cst_31 [1] : vector<2x32xf32> to vector<2xf32>
    %212 = vector.shape_cast %211 : vector<2xf32> to vector<2x1xf32>
    %213 = vector.broadcast %20 : f32 to vector<2x1xf32>
    %214 = arith.addf %212, %213 : vector<2x1xf32>
    %215 = arith.maximumf %172, %214 : vector<2x1xf32>
    %216 = arith.subf %172, %215 : vector<2x1xf32>
    %217 = math.exp %216 : vector<2x1xf32>
    %218 = arith.subf %214, %215 : vector<2x1xf32>
    %219 = math.exp %218 : vector<2x1xf32>
    %220 = arith.mulf %217, %178 : vector<2x1xf32>
    %221 = arith.addf %220, %219 : vector<2x1xf32>
    %222 = vector.broadcast %217 : vector<2x1xf32> to vector<2x32xf32>
    %223 = arith.mulf %222, %183 : vector<2x32xf32>
    %224 = vector.broadcast %219 : vector<2x1xf32> to vector<2x32xf32>
    %225 = arith.mulf %224, %209 : vector<2x32xf32>
    %226 = arith.addf %223, %225 : vector<2x32xf32>
    %cst_32 = arith.constant dense<0.000000e+00> : vector<2x96xf32>
    %227 = tpu.matmul %209, %9, %cst_32 {dimension_numbers = #tpu.dot_dimension_numbers<[1], [0], [0], [1], [0, 0, 1, 1], [], []>} : vector<2x32xf32>, vector<32x96xf32>, vector<2x96xf32> -> vector<2x96xf32>
    %228 = vector.extract_strided_slice %6 {offsets = [10, 0], sizes = [2, 32], strides = [1, 1]} : vector<16x32xf32> to vector<2x32xf32>
    %229 = vector.extract_strided_slice %227 {offsets = [0, 0], sizes = [2, 32], strides = [1, 1]} : vector<2x96xf32> to vector<2x32xf32>
    %230 = arith.addf %228, %229 : vector<2x32xf32>
    %231 = arith.negf %230 : vector<2x32xf32>
    %232 = math.exp %231 : vector<2x32xf32>
    %cst_33 = arith.constant 1.000000e+00 : f32
    %233 = vector.broadcast %cst_33 : f32 to vector<2x32xf32>
    %234 = arith.addf %233, %232 : vector<2x32xf32>
    %235 = arith.divf %233, %234 : vector<2x32xf32>
    %236 = vector.extract_strided_slice %7 {offsets = [10, 0], sizes = [2, 32], strides = [1, 1]} : vector<16x32xf32> to vector<2x32xf32>
    %237 = vector.extract_strided_slice %227 {offsets = [0, 32], sizes = [2, 32], strides = [1, 1]} : vector<2x96xf32> to vector<2x32xf32>
    %238 = arith.addf %236, %237 : vector<2x32xf32>
    %239 = arith.negf %238 : vector<2x32xf32>
    %240 = math.exp %239 : vector<2x32xf32>
    %cst_34 = arith.constant 1.000000e+00 : f32
    %241 = vector.broadcast %cst_34 : f32 to vector<2x32xf32>
    %242 = arith.addf %241, %240 : vector<2x32xf32>
    %243 = arith.divf %241, %242 : vector<2x32xf32>
    %244 = vector.extract_strided_slice %8 {offsets = [10, 0], sizes = [2, 32], strides = [1, 1]} : vector<16x32xf32> to vector<2x32xf32>
    %245 = vector.extract_strided_slice %227 {offsets = [0, 64], sizes = [2, 32], strides = [1, 1]} : vector<2x96xf32> to vector<2x32xf32>
    %246 = arith.addf %245, %13 : vector<2x32xf32>
    %247 = arith.mulf %235, %246 : vector<2x32xf32>
    %248 = arith.addf %244, %247 : vector<2x32xf32>
    %249 = math.tanh %248 : vector<2x32xf32>
    %250 = arith.subf %209, %249 : vector<2x32xf32>
    %251 = arith.mulf %243, %250 : vector<2x32xf32>
    %252 = arith.addf %249, %251 : vector<2x32xf32>
    %253 = arith.mulf %252, %16 : vector<2x32xf32>
    %cst_35 = arith.constant dense<0.000000e+00> : vector<2xf32>
    %254 = vector.multi_reduction <add>, %253, %cst_35 [1] : vector<2x32xf32> to vector<2xf32>
    %255 = vector.shape_cast %254 : vector<2xf32> to vector<2x1xf32>
    %256 = vector.broadcast %20 : f32 to vector<2x1xf32>
    %257 = arith.addf %255, %256 : vector<2x1xf32>
    %258 = arith.maximumf %215, %257 : vector<2x1xf32>
    %259 = arith.subf %215, %258 : vector<2x1xf32>
    %260 = math.exp %259 : vector<2x1xf32>
    %261 = arith.subf %257, %258 : vector<2x1xf32>
    %262 = math.exp %261 : vector<2x1xf32>
    %263 = arith.mulf %260, %221 : vector<2x1xf32>
    %264 = arith.addf %263, %262 : vector<2x1xf32>
    %265 = vector.broadcast %260 : vector<2x1xf32> to vector<2x32xf32>
    %266 = arith.mulf %265, %226 : vector<2x32xf32>
    %267 = vector.broadcast %262 : vector<2x1xf32> to vector<2x32xf32>
    %268 = arith.mulf %267, %252 : vector<2x32xf32>
    %269 = arith.addf %266, %268 : vector<2x32xf32>
    %cst_36 = arith.constant dense<0.000000e+00> : vector<2x96xf32>
    %270 = tpu.matmul %252, %9, %cst_36 {dimension_numbers = #tpu.dot_dimension_numbers<[1], [0], [0], [1], [0, 0, 1, 1], [], []>} : vector<2x32xf32>, vector<32x96xf32>, vector<2x96xf32> -> vector<2x96xf32>
    %271 = vector.extract_strided_slice %6 {offsets = [12, 0], sizes = [2, 32], strides = [1, 1]} : vector<16x32xf32> to vector<2x32xf32>
    %272 = vector.extract_strided_slice %270 {offsets = [0, 0], sizes = [2, 32], strides = [1, 1]} : vector<2x96xf32> to vector<2x32xf32>
    %273 = arith.addf %271, %272 : vector<2x32xf32>
    %274 = arith.negf %273 : vector<2x32xf32>
    %275 = math.exp %274 : vector<2x32xf32>
    %cst_37 = arith.constant 1.000000e+00 : f32
    %276 = vector.broadcast %cst_37 : f32 to vector<2x32xf32>
    %277 = arith.addf %276, %275 : vector<2x32xf32>
    %278 = arith.divf %276, %277 : vector<2x32xf32>
    %279 = vector.extract_strided_slice %7 {offsets = [12, 0], sizes = [2, 32], strides = [1, 1]} : vector<16x32xf32> to vector<2x32xf32>
    %280 = vector.extract_strided_slice %270 {offsets = [0, 32], sizes = [2, 32], strides = [1, 1]} : vector<2x96xf32> to vector<2x32xf32>
    %281 = arith.addf %279, %280 : vector<2x32xf32>
    %282 = arith.negf %281 : vector<2x32xf32>
    %283 = math.exp %282 : vector<2x32xf32>
    %cst_38 = arith.constant 1.000000e+00 : f32
    %284 = vector.broadcast %cst_38 : f32 to vector<2x32xf32>
    %285 = arith.addf %284, %283 : vector<2x32xf32>
    %286 = arith.divf %284, %285 : vector<2x32xf32>
    %287 = vector.extract_strided_slice %8 {offsets = [12, 0], sizes = [2, 32], strides = [1, 1]} : vector<16x32xf32> to vector<2x32xf32>
    %288 = vector.extract_strided_slice %270 {offsets = [0, 64], sizes = [2, 32], strides = [1, 1]} : vector<2x96xf32> to vector<2x32xf32>
    %289 = arith.addf %288, %13 : vector<2x32xf32>
    %290 = arith.mulf %278, %289 : vector<2x32xf32>
    %291 = arith.addf %287, %290 : vector<2x32xf32>
    %292 = math.tanh %291 : vector<2x32xf32>
    %293 = arith.subf %252, %292 : vector<2x32xf32>
    %294 = arith.mulf %286, %293 : vector<2x32xf32>
    %295 = arith.addf %292, %294 : vector<2x32xf32>
    %296 = arith.mulf %295, %16 : vector<2x32xf32>
    %cst_39 = arith.constant dense<0.000000e+00> : vector<2xf32>
    %297 = vector.multi_reduction <add>, %296, %cst_39 [1] : vector<2x32xf32> to vector<2xf32>
    %298 = vector.shape_cast %297 : vector<2xf32> to vector<2x1xf32>
    %299 = vector.broadcast %20 : f32 to vector<2x1xf32>
    %300 = arith.addf %298, %299 : vector<2x1xf32>
    %301 = arith.maximumf %258, %300 : vector<2x1xf32>
    %302 = arith.subf %258, %301 : vector<2x1xf32>
    %303 = math.exp %302 : vector<2x1xf32>
    %304 = arith.subf %300, %301 : vector<2x1xf32>
    %305 = math.exp %304 : vector<2x1xf32>
    %306 = arith.mulf %303, %264 : vector<2x1xf32>
    %307 = arith.addf %306, %305 : vector<2x1xf32>
    %308 = vector.broadcast %303 : vector<2x1xf32> to vector<2x32xf32>
    %309 = arith.mulf %308, %269 : vector<2x32xf32>
    %310 = vector.broadcast %305 : vector<2x1xf32> to vector<2x32xf32>
    %311 = arith.mulf %310, %295 : vector<2x32xf32>
    %312 = arith.addf %309, %311 : vector<2x32xf32>
    %cst_40 = arith.constant dense<0.000000e+00> : vector<2x96xf32>
    %313 = tpu.matmul %295, %9, %cst_40 {dimension_numbers = #tpu.dot_dimension_numbers<[1], [0], [0], [1], [0, 0, 1, 1], [], []>} : vector<2x32xf32>, vector<32x96xf32>, vector<2x96xf32> -> vector<2x96xf32>
    %314 = vector.extract_strided_slice %6 {offsets = [14, 0], sizes = [2, 32], strides = [1, 1]} : vector<16x32xf32> to vector<2x32xf32>
    %315 = vector.extract_strided_slice %313 {offsets = [0, 0], sizes = [2, 32], strides = [1, 1]} : vector<2x96xf32> to vector<2x32xf32>
    %316 = arith.addf %314, %315 : vector<2x32xf32>
    %317 = arith.negf %316 : vector<2x32xf32>
    %318 = math.exp %317 : vector<2x32xf32>
    %cst_41 = arith.constant 1.000000e+00 : f32
    %319 = vector.broadcast %cst_41 : f32 to vector<2x32xf32>
    %320 = arith.addf %319, %318 : vector<2x32xf32>
    %321 = arith.divf %319, %320 : vector<2x32xf32>
    %322 = vector.extract_strided_slice %7 {offsets = [14, 0], sizes = [2, 32], strides = [1, 1]} : vector<16x32xf32> to vector<2x32xf32>
    %323 = vector.extract_strided_slice %313 {offsets = [0, 32], sizes = [2, 32], strides = [1, 1]} : vector<2x96xf32> to vector<2x32xf32>
    %324 = arith.addf %322, %323 : vector<2x32xf32>
    %325 = arith.negf %324 : vector<2x32xf32>
    %326 = math.exp %325 : vector<2x32xf32>
    %cst_42 = arith.constant 1.000000e+00 : f32
    %327 = vector.broadcast %cst_42 : f32 to vector<2x32xf32>
    %328 = arith.addf %327, %326 : vector<2x32xf32>
    %329 = arith.divf %327, %328 : vector<2x32xf32>
    %330 = vector.extract_strided_slice %8 {offsets = [14, 0], sizes = [2, 32], strides = [1, 1]} : vector<16x32xf32> to vector<2x32xf32>
    %331 = vector.extract_strided_slice %313 {offsets = [0, 64], sizes = [2, 32], strides = [1, 1]} : vector<2x96xf32> to vector<2x32xf32>
    %332 = arith.addf %331, %13 : vector<2x32xf32>
    %333 = arith.mulf %321, %332 : vector<2x32xf32>
    %334 = arith.addf %330, %333 : vector<2x32xf32>
    %335 = math.tanh %334 : vector<2x32xf32>
    %336 = arith.subf %295, %335 : vector<2x32xf32>
    %337 = arith.mulf %329, %336 : vector<2x32xf32>
    %338 = arith.addf %335, %337 : vector<2x32xf32>
    %339 = arith.mulf %338, %16 : vector<2x32xf32>
    %cst_43 = arith.constant dense<0.000000e+00> : vector<2xf32>
    %340 = vector.multi_reduction <add>, %339, %cst_43 [1] : vector<2x32xf32> to vector<2xf32>
    %341 = vector.shape_cast %340 : vector<2xf32> to vector<2x1xf32>
    %342 = vector.broadcast %20 : f32 to vector<2x1xf32>
    %343 = arith.addf %341, %342 : vector<2x1xf32>
    %344 = arith.maximumf %301, %343 : vector<2x1xf32>
    %345 = arith.subf %301, %344 : vector<2x1xf32>
    %346 = math.exp %345 : vector<2x1xf32>
    %347 = arith.subf %343, %344 : vector<2x1xf32>
    %348 = math.exp %347 : vector<2x1xf32>
    %349 = arith.mulf %346, %307 : vector<2x1xf32>
    %350 = arith.addf %349, %348 : vector<2x1xf32>
    %351 = vector.broadcast %346 : vector<2x1xf32> to vector<2x32xf32>
    %352 = arith.mulf %351, %312 : vector<2x32xf32>
    %353 = vector.broadcast %348 : vector<2x1xf32> to vector<2x32xf32>
    %354 = arith.mulf %353, %338 : vector<2x32xf32>
    %355 = arith.addf %352, %354 : vector<2x32xf32>
    %356 = vector.broadcast %350 : vector<2x1xf32> to vector<2x32xf32>
    %357 = arith.divf %355, %356 : vector<2x32xf32>
    %358 = arith.mulf %357, %19 : vector<2x32xf32>
    %cst_44 = arith.constant dense<0.000000e+00> : vector<2xf32>
    %359 = vector.multi_reduction <add>, %358, %cst_44 [1] : vector<2x32xf32> to vector<2xf32>
    %360 = vector.shape_cast %359 : vector<2xf32> to vector<2x1xf32>
    %361 = vector.broadcast %21 : f32 to vector<2x1xf32>
    %362 = arith.addf %360, %361 : vector<2x1xf32>
    %c0_45 = arith.constant 0 : index
    %c0_46 = arith.constant 0 : index
    %363 = vector.load %arg5[%c0_45, %c0_46] : memref<2x1xf32, #tpu.memory_space<vmem>>, vector<2x1xf32>
    tpu.vector_store %arg5[%c0_45, %c0_46], %362 {strides = array<i32>} : memref<2x1xf32, #tpu.memory_space<vmem>>, vector<2x1xf32>,
    return
  }
}

</mosaic_0001>

<bundles_post_ra>
// kernel: gru_forward.1
= control target key start
LH: loop header
LB: loop body
LE: loop exit
PB: predicated region body
PF: predicated region fallthrough
CT: control target
= control target key end

     0   :  { %10 = vsyncpa [#allocation3], 0  ;;  %s1961_s0 = inlined_call_operand.vmem [shape: f32[16,29], index: 0, kind: input, shape index: {}]   ;;  %s1962_s1 = inlined_call_operand.vmem [shape: f32[29,96], index: 1, kind: input, shape index: {}]   ;;  %s1963_s2 = inlined_call_operand.vmem [shape: f32[32,96], index: 2, kind: input, shape index: {}]   ;;  %s1964_s3 = inlined_call_operand.vmem [shape: f32[2,96], index: 3, kind: input, shape index: {}]   ;;  %s1965_s4 = inlined_call_operand.vmem [shape: f32[2], index: 4, kind: input, shape index: {}]   ;;  %s1966_s5 = inlined_call_operand.vmem [shape: f32[2,1], index: 5, kind: output, shape index: {}]  }
   0x1   :  { %s25_s20 = sshll.u32 %s1965_s4, 4  ;;  %s26_s20 = int_to_ptr.vmem [resolvable:$true] %s25_s20 }
   0x2   :  { %s1618_s21 = scalar_lea.vmem %s26_s20, 16  ;;  %p1623_p1 = scmp.lt.s32.totalorder %s26_s20, %s26_s20 }
   0x3   :  { %p1619_p0 = scmp.ne.s32.totalorder %s26_s20, %s1618_s21  ;;  %p1624_p2 = scmp.lt.s32.totalorder %s1618_s21, %s1618_s21 }
   0x5   :  { %p1625_p3 = por %p1624_p2, %p1623_p1 }
   0x7   :  { %p1626_p4 = pnand %p1625_p3, %p1619_p0 }
   0x9   :  { %1629 = shalt.err (!%p1626_p4)
}
   0xa   :  { %s1632_s22 = smov [#allocation2]  }
   0xb   :  { %28 = dma.vmem_to_smem %s26_s20, 16, %s1632_s22, [#allocation3]  }
   0xc   :  { %1630 = dma.done.wait [#allocation3], 16  }
   0xd   :  { %1631 = vsyncadd [#allocation3], 4294967280 }
   0xe   :  { %32 = sfence }
   0xf   :  { %v38_v0 = vld [vmem:[%s1962_s1 + $0x18] sm:$0x1f]  ;;  %vm51_vm0 = vcmask 1044480   ;;  %v37_v2 = vld [vmem:[%s1962_s1 + $0x10] sm:$0xff]  ;;  %v1633_v3 = vmov 0.0   ;;  %v36_v5 = vld [vmem:[%s1962_s1 + $0x8] sm:$0xff] }
  0x10   :  { %v1678_v1 = vld [vmem:[%s1963_s2 + $0x18] sm:$0xff]  ;;  %1431 = vmatprep.subr.msk.mxu0 %vm51_vm0, %v38_v0  ;;  %1442 = vmatprep.subr.mxu1 %v1633_v3  ;;  %v1687_v4 = vld [vmem:[%s1963_s2 + $0x10] sm:$0xff]  ;;  %v1697_v6 = vld [vmem:[%s1963_s2 + $0x8] sm:$0xff]  ;;  %vm44_vm1 = vcmask 236544   ;;  %vm1634_vm2 = vmmov 0   ;;  %s1636_s19 = smov 96  }
  0x11   :  { %1432 = vmatpush3.msk.msra.mxu0 %vm51_vm0, %v38_v0  ;;  %1443 = vmatpush3.msra.mxu1 %v1678_v1  ;;  %v35_v7 = vld [vmem:[%s1962_s1] sm:$0xff]  ;;  %v34_v10 = vld [vmem:[%s1961_s0 + $0x8] sm:$0xff]  ;;  %s1637_s20 = smov 32   ;;  %vm141_vm3 = vcmask 261120   ;;  %vm257_vm4 = vcmask 254976   ;;  %vm694_vm5 = vcmask 261126  }
  0x12   :  { %1433 = vmatprep.subr.mxu0 %v37_v2  ;;  %1444 = vmatprep.subr.mxu1 %v1633_v3  ;;  %v33_v8 = vld [vmem:[%s1961_s0] sm:$0xff]  ;;  %vm381_vm6 = vcmask 257026   ;;  %vm537_vm7 = vcmask 259076   ;;  %s139_s21 = sld [smem:[#allocation2]]  ;;  %vm1357_vm8 = vcmask 1024  }
  0x13   :  { %1434 = vmatpush3.msra.mxu0 %v37_v2  ;;  %1445 = vmatpush3.msra.mxu1 %v1687_v4  ;;  %v1711_v9 = vld [vmem:[%s1963_s2] sm:$0xff]  ;;  %s1635_s2 = smov 64   ;;  %s1369_s24 = sld [smem:[#allocation2 + $0x1]] }
  0x14   :  { %1435 = vmatprep.subr.mxu0 %v36_v5  ;;  %1446 = vmatprep.subr.mxu1 %v1633_v3  ;;  %v1720_v11 = vld [vmem:[%s1964_s3 + $0x1] ss:$0 sm:$0xff]  ;;  %v1364_v14 = vld [vmem:[%s1964_s3] ss:$0 sm:$0xff] }
  0x15   :  { %1436 = vmatpush3.msra.mxu0 %v36_v5  ;;  %1447 = vmatpush3.msra.mxu1 %v1697_v6 }
  0x16   :  { %1437 = vmatprep.subr.mxu0 %v35_v7  ;;  %1448 = vmatprep.subr.mxu1 %v1633_v3 }
  0x17   :  { %1438 = vmatpush3.msra.mxu0 %v35_v7  ;;  %1439 = vmatprep.mubr.msk.f32.mxu0 %vm44_vm1, %v33_v8 }
  0x18   :  { %1449 = vmatpush3.msra.mxu1 %v1711_v9  ;;  %1450 = vmatprep.mubr.msk.f32.mxu1 %vm1634_vm2, %v1633_v3 }
  0x19   :  { %1440 = vmatmul.mubr.msk.f32.vlgmr.msra.gmra.mxu0 %vm44_vm1, %v34_v10  ;;  %1451 = vmatmul.mubr.f32.vlgmr.msra.gmra.mxu1 %v1633_v3 }
  0x1a   :  { %223 = vrot.lane.b32.xlu0 %v1720_v11, %s1635_s2  ;;  %1453 = vmatprep.subr.mxu0 %v1633_v3 }
  0x1b   :  { %1454 = vmatpush3.msra.mxu0 %v1678_v1  ;;  %1461 = vmatprep.mubr.msk.f32.mxu0 %vm1634_vm2, %v1633_v3 }
  0x1c   :  { %1455 = vmatprep.subr.mxu0 %v1633_v3  ;;  %1464 = vmatprep.subr.mxu1 %v1633_v3 }
  0x1d   :  { %1456 = vmatpush3.msra.mxu0 %v1687_v4  ;;  %1465 = vmatpush3.msra.mxu1 %v1678_v1 }
  0x1e   :  { %1457 = vmatprep.subr.mxu0 %v1633_v3  ;;  %1466 = vmatprep.subr.mxu1 %v1633_v3 }
  0x1f   :  { %1458 = vmatpush3.msra.mxu0 %v1697_v6  ;;  %1467 = vmatpush3.msra.mxu1 %v1687_v4 }
  0x20   :  { %1459 = vmatprep.subr.mxu0 %v1633_v3  ;;  %1468 = vmatprep.subr.mxu1 %v1633_v3 }
  0x21   :  { %1460 = vmatpush3.msra.mxu0 %v1711_v9  ;;  %1469 = vmatpush3.msra.mxu1 %v1697_v6 }
  0x22   :  { %1470 = vmatprep.subr.mxu1 %v1633_v3  ;;  %1472 = vmatprep.mubr.msk.f32.mxu1 %vm1634_vm2, %v1633_v3 }
  0x23   :  { %1471 = vmatpush3.msra.mxu1 %v1711_v9  ;;  %1475 = vmatprep.subr.mxu0 %v1633_v3 }
  0x24   :  { %1486 = vmatprep.subr.mxu1 %v1633_v3 }
  0x8c   :  { %v1750_v12 = vpop.permute.xlu0 %223 }
  0xd9   :  { %v1441_v13 = vpop.f32.mrf.mxu0  ;;  %v211_v15 = vpop.f32.mrf.mxu1 }
  0xda   :  { %v1755_v16 = vadd.f32 %v1441_v13, %v1364_v14  ;;  %v226_v17 = vadd.f32 %v1750_v12, %v211_v15 }
  0xdb   :  { %v1452_v18 = vpop.f32.mrf.mxu1  ;;  %v121_v19 = vpop.f32.mrf.mxu0 }
  0xdc   :  { %228 = vrot.lane.b32.xlu0 %v226_v17, %s1635_s2  ;;  %v1759_v20 = vadd.f32 %v1364_v14, %v121_v19 }
  0xde   :  { %v215_v21 = vadd.f32 %v211_v15, %v1759_v20 }
  0xe0   :  { %v1370_v22 = vmul.f32 -1.442695, %v215_v21 }
  0xe2   :  { %1539 = vpow2.f32 %v1370_v22 }
  0xef   :  { %v1540_v23 = vpop.eup %1539 }
  0xf0   :  { %v219_v24 = vadd.f32 1.0, %v1540_v23 }
  0xf2   :  { %1541 = vrcp.f32 %v219_v24 }
  0xff   :  { %v1542_v25 = vpop.eup %1541 }
 0x14e   :  { %v229_v26 = vpop.permute.xlu0 %228 }
 0x14f   :  { %v231_v27 = vmul.f32 %v1542_v25, %v229_v26 }
 0x151   :  { %233 = vrot.lane.b32.xlu1 %v231_v27, %s1635_s2 }
 0x1c3   :  { %v234_v28 = vpop.permute.xlu1 %233 }
 0x1c4   :  { %v236_v29 = vadd.f32 %v234_v28, %v1759_v20 }
 0x1c6   :  { %1543 = vtanh.f32 %v236_v29 }
 0x1d3   :  { %v1544_v30 = vpop.eup %1543 }
 0x1d4   :  { %v238_v31 = vsub.f32 0.0, %v1544_v30 }
 0x1d6   :  { %240 = vrot.lane.b32.xlu1 %v238_v31, %s1636_s19 }
 0x248   :  { %v241_v32 = vpop.permute.xlu1 %240 }
 0x249   :  { %v243_v33 = vmul.f32 %v1542_v25, %v241_v32 }
 0x24b   :  { %245 = vrot.lane.b32.xlu0 %v243_v33, %s1637_s20 }
 0x2bd   :  { %v246_v34 = vpop.permute.xlu0 %245 }
 0x2be   :  { %v1766_v35 = vadd.f32 %v1544_v30, %v246_v34 }
 0x2c0   :  { %264 = vrot.lane.b32.xlu1 %v1766_v35, %s1635_s2 }
 0x332   :  { %v265_v36 = vpop.permute.xlu1 %264 }
 0x333   :  { %1462 = vmatmul.mubr.msk.f32.vlgmr.msra.gmra.mxu0 %vm141_vm3, %v265_v36 }
 0x334   :  { %1476 = vmatpush3.msra.mxu0 %v1678_v1  ;;  %1483 = vmatprep.mubr.msk.f32.mxu0 %vm1634_vm2, %v1633_v3 }
 0x335   :  { %1477 = vmatprep.subr.mxu0 %v1633_v3 }
 0x336   :  { %1478 = vmatpush3.msra.mxu0 %v1687_v4 }
 0x337   :  { %1479 = vmatprep.subr.mxu0 %v1633_v3 }
 0x338   :  { %1480 = vmatpush3.msra.mxu0 %v1697_v6 }
 0x339   :  { %1481 = vmatprep.subr.mxu0 %v1633_v3 }
 0x33a   :  { %1482 = vmatpush3.msra.mxu0 %v1711_v9 }
 0x33b   :  { %1497 = vmatprep.subr.mxu0 %v1633_v3 }
 0x3f3   :  { %v334_v37 = vpop.f32.mrf.mxu0 }
 0x3f4   :  { %v348_v38 = vadd.f32 %v334_v37, %v1750_v12  ;;  %v339_v41 = vrot.slane %v334_v37, 6 }
 0x3f5   :  { %v1463_v39 = vpop.f32.mrf.mxu0 }
 0x3f6   :  { %v350_v40 = vrot.slane %v348_v38, 6  ;;  %v341_v42 = vadd.f32 %v339_v41, %v1759_v20 }
 0x3f8   :  { %351 = vrot.lane.b32.xlu0 %v350_v40, %s1635_s2  ;;  %v1372_v43 = vmul.f32 -1.442695, %v341_v42 }
 0x3fa   :  { %1545 = vpow2.f32 %v1372_v43 }
 0x407   :  { %v1546_v44 = vpop.eup %1545 }
 0x408   :  { %v345_v45 = vadd.f32 1.0, %v1546_v44 }
 0x40a   :  { %1547 = vrcp.f32 %v345_v45 }
 0x417   :  { %v1548_v46 = vpop.eup %1547 }
 0x46a   :  { %v352_v47 = vpop.permute.xlu0 %351 }
 0x46b   :  { %v354_v48 = vmul.f32 %v1548_v46, %v352_v47 }
 0x46d   :  { %356 = vrot.lane.b32.xlu1 %v354_v48, %s1635_s2 }
 0x4df   :  { %v357_v49 = vpop.permute.xlu1 %356 }
 0x4e0   :  { %v359_v50 = vadd.f32 %v357_v49, %v1759_v20 }
 0x4e2   :  { %1549 = vtanh.f32 %v359_v50 }
 0x4ef   :  { %v1550_v51 = vpop.eup %1549 }
 0x4f0   :  { %v362_v52 = vrot.slane %v1550_v51, 2 }
 0x4f2   :  { %v364_v53 = vsub.f32 %v1766_v35, %v362_v52 }
 0x4f4   :  { %v366_v54 = vrot.slane %v364_v53, 6 }
 0x4f6   :  { %367 = vrot.lane.b32.xlu0 %v366_v54, %s1636_s19 }
 0x568   :  { %v368_v55 = vpop.permute.xlu0 %367 }
 0x569   :  { %v370_v56 = vmul.f32 %v1548_v46, %v368_v55 }
 0x56b   :  { %372 = vrot.lane.b32.xlu1 %v370_v56, %s1637_s20 }
 0x5dd   :  { %v373_v57 = vpop.permute.xlu1 %372 }
 0x5de   :  { %v1789_v58 = vadd.f32 %v1550_v51, %v373_v57 }
 0x5e0   :  { %v419_v59 = vrot.slane %v1789_v58, 2 }
 0x5e2   :  { %420 = vrot.lane.b32.xlu0 %v419_v59, %s1635_s2 }
 0x654   :  { %v421_v60 = vpop.permute.xlu0 %420 }
 0x655   :  { %1473 = vmatmul.mubr.msk.f32.vlgmr.msra.gmra.mxu1 %vm141_vm3, %v421_v60 }
 0x656   :  { %1487 = vmatpush3.msra.mxu1 %v1678_v1  ;;  %1494 = vmatprep.mubr.msk.f32.mxu1 %vm1634_vm2, %v1633_v3 }
 0x657   :  { %1488 = vmatprep.subr.mxu1 %v1633_v3 }
 0x658   :  { %1489 = vmatpush3.msra.mxu1 %v1687_v4 }
 0x659   :  { %1490 = vmatprep.subr.mxu1 %v1633_v3 }
 0x65a   :  { %1491 = vmatpush3.msra.mxu1 %v1697_v6 }
 0x65b   :  { %1492 = vmatprep.subr.mxu1 %v1633_v3 }
 0x65c   :  { %1493 = vmatpush3.msra.mxu1 %v1711_v9 }
 0x65d   :  { %1508 = vmatprep.subr.mxu1 %v1633_v3 }
 0x715   :  { %v490_v61 = vpop.f32.mrf.mxu1 }
 0x716   :  { %v504_v62 = vadd.f32 %v490_v61, %v1750_v12  ;;  %v495_v2 = vrot.slane %v490_v61, 4 }
 0x717   :  { %v1474_v63 = vpop.f32.mrf.mxu1 }
 0x718   :  { %v506_v0 = vrot.slane %v504_v62, 4  ;;  %v497_v5 = vadd.f32 %v495_v2, %v1759_v20 }
 0x71a   :  { %507 = vrot.lane.b32.xlu1 %v506_v0, %s1635_s2  ;;  %v1374_v7 = vmul.f32 -1.442695, %v497_v5 }
 0x71c   :  { %1551 = vpow2.f32 %v1374_v7 }
 0x729   :  { %v1552_v8 = vpop.eup %1551 }
 0x72a   :  { %v501_v10 = vadd.f32 1.0, %v1552_v8 }
 0x72c   :  { %1553 = vrcp.f32 %v501_v10 }
 0x739   :  { %v1554_v13 = vpop.eup %1553 }
 0x78c   :  { %v508_v14 = vpop.permute.xlu1 %507 }
 0x78d   :  { %v510_v15 = vmul.f32 %v1554_v13, %v508_v14 }
 0x78f   :  { %512 = vrot.lane.b32.xlu0 %v510_v15, %s1635_s2 }
 0x801   :  { %v513_v17 = vpop.permute.xlu0 %512 }
 0x802   :  { %v515_v18 = vadd.f32 %v513_v17, %v1759_v20 }
 0x804   :  { %1555 = vtanh.f32 %v515_v18 }
 0x811   :  { %v1556_v19 = vpop.eup %1555 }
 0x812   :  { %v518_v21 = vrot.slane %v1556_v19, 2 }
 0x814   :  { %v520_v22 = vsub.f32 %v1789_v58, %v518_v21 }
 0x816   :  { %v522_v23 = vrot.slane %v520_v22, 6 }
 0x818   :  { %523 = vrot.lane.b32.xlu1 %v522_v23, %s1636_s19 }
 0x88a   :  { %v524_v24 = vpop.permute.xlu1 %523 }
 0x88b   :  { %v526_v25 = vmul.f32 %v1554_v13, %v524_v24 }
 0x88d   :  { %528 = vrot.lane.b32.xlu0 %v526_v25, %s1637_s20 }
 0x8ff   :  { %v529_v26 = vpop.permute.xlu0 %528 }
 0x900   :  { %v1812_v27 = vadd.f32 %v1556_v19, %v529_v26 }
 0x902   :  { %v576_v28 = vrot.slane %v1812_v27, 4 }
 0x904   :  { %577 = vrot.lane.b32.xlu1 %v576_v28, %s1635_s2 }
 0x976   :  { %v578_v29 = vpop.permute.xlu1 %577 }
 0x977   :  { %1484 = vmatmul.mubr.msk.f32.vlgmr.msra.gmra.mxu0 %vm141_vm3, %v578_v29 }
 0x978   :  { %1498 = vmatpush3.msra.mxu0 %v1678_v1  ;;  %1505 = vmatprep.mubr.msk.f32.mxu0 %vm1634_vm2, %v1633_v3 }
 0x979   :  { %1499 = vmatprep.subr.mxu0 %v1633_v3 }
 0x97a   :  { %1500 = vmatpush3.msra.mxu0 %v1687_v4 }
 0x97b   :  { %1501 = vmatprep.subr.mxu0 %v1633_v3 }
 0x97c   :  { %1502 = vmatpush3.msra.mxu0 %v1697_v6 }
 0x97d   :  { %1503 = vmatprep.subr.mxu0 %v1633_v3 }
 0x97e   :  { %1504 = vmatpush3.msra.mxu0 %v1711_v9 }
 0x97f   :  { %1519 = vmatprep.subr.mxu0 %v1633_v3 }
 0xa37   :  { %v647_v30 = vpop.f32.mrf.mxu0 }
 0xa38   :  { %v661_v31 = vadd.f32 %v647_v30, %v1750_v12  ;;  %v652_v34 = vrot.slane %v647_v30, 2 }
 0xa39   :  { %v1485_v32 = vpop.f32.mrf.mxu0 }
 0xa3a   :  { %v663_v33 = vrot.slane %v661_v31, 2  ;;  %v654_v36 = vadd.f32 %v652_v34, %v1759_v20 }
 0xa3c   :  { %664 = vrot.lane.b32.xlu0 %v663_v33, %s1635_s2  ;;  %v1376_v37 = vmul.f32 -1.442695, %v654_v36 }
 0xa3e   :  { %1557 = vpow2.f32 %v1376_v37 }
 0xa4b   :  { %v1558_v38 = vpop.eup %1557 }
 0xa4c   :  { %v658_v39 = vadd.f32 1.0, %v1558_v38 }
 0xa4e   :  { %1559 = vrcp.f32 %v658_v39 }
 0xa5b   :  { %v1560_v40 = vpop.eup %1559 }
 0xaae   :  { %v665_v41 = vpop.permute.xlu0 %664 }
 0xaaf   :  { %v667_v42 = vmul.f32 %v1560_v40, %v665_v41 }
 0xab1   :  { %669 = vrot.lane.b32.xlu1 %v667_v42, %s1635_s2 }
 0xb23   :  { %v670_v43 = vpop.permute.xlu1 %669 }
 0xb24   :  { %v672_v44 = vadd.f32 %v670_v43, %v1759_v20 }
 0xb26   :  { %1561 = vtanh.f32 %v672_v44 }
 0xb33   :  { %v1562_v45 = vpop.eup %1561 }
 0xb34   :  { %v675_v46 = vrot.slane %v1562_v45, 2 }
 0xb36   :  { %v677_v47 = vsub.f32 %v1812_v27, %v675_v46 }
 0xb38   :  { %v679_v48 = vrot.slane %v677_v47, 6 }
 0xb3a   :  { %680 = vrot.lane.b32.xlu0 %v679_v48, %s1636_s19 }
 0xbac   :  { %v681_v49 = vpop.permute.xlu0 %680 }
 0xbad   :  { %v683_v50 = vmul.f32 %v1560_v40, %v681_v49 }
 0xbaf   :  { %685 = vrot.lane.b32.xlu1 %v683_v50, %s1637_s20 }
 0xc21   :  { %v686_v51 = vpop.permute.xlu1 %685 }
 0xc22   :  { %v1835_v52 = vadd.f32 %v1562_v45, %v686_v51 }
 0xc24   :  { %v733_v53 = vrot.slane %v1835_v52, 6 }
 0xc26   :  { %734 = vrot.lane.b32.xlu0 %v733_v53, %s1635_s2 }
 0xc98   :  { %v735_v20 = vpop.permute.xlu0 %734 }
 0xc99   :  { %1495 = vmatmul.mubr.msk.f32.vlgmr.msra.gmra.mxu1 %vm141_vm3, %v735_v20 }
 0xc9a   :  { %1509 = vmatpush3.msra.mxu1 %v1678_v1  ;;  %1516 = vmatprep.mubr.msk.f32.mxu1 %vm1634_vm2, %v1633_v3 }
 0xc9b   :  { %1510 = vmatprep.subr.mxu1 %v1633_v3 }
 0xc9c   :  { %1511 = vmatpush3.msra.mxu1 %v1687_v4 }
 0xc9d   :  { %1512 = vmatprep.subr.mxu1 %v1633_v3 }
 0xc9e   :  { %1513 = vmatpush3.msra.mxu1 %v1697_v6 }
 0xc9f   :  { %1514 = vmatprep.subr.mxu1 %v1633_v3 }
 0xca0   :  { %1515 = vmatpush3.msra.mxu1 %v1711_v9 }
 0xd59   :  { %v804_v54 = vpop.f32.mrf.mxu1 }
 0xd5a   :  { %v815_v55 = vadd.f32 %v804_v54, %v1750_v12  ;;  %v808_v57 = vadd.f32 %v804_v54, %v1755_v16 }
 0xd5b   :  { %v1496_v56 = vpop.f32.mrf.mxu1 }
 0xd5c   :  { %817 = vrot.lane.b32.xlu1 %v815_v55, %s1635_s2  ;;  %v1378_v59 = vmul.f32 -1.442695, %v808_v57 }
 0xd5e   :  { %1563 = vpow2.f32 %v1378_v59 }
 0xd6b   :  { %v1564_v60 = vpop.eup %1563 }
 0xd6c   :  { %v812_v61 = vadd.f32 1.0, %v1564_v60 }
 0xd6e   :  { %1565 = vrcp.f32 %v812_v61 }
 0xd7b   :  { %v1566_v62 = vpop.eup %1565 }
 0xdce   :  { %v818_v63 = vpop.permute.xlu1 %817 }
 0xdcf   :  { %v820_v0 = vmul.f32 %v1566_v62, %v818_v63 }
 0xdd1   :  { %822 = vrot.lane.b32.xlu0 %v820_v0, %s1635_s2 }
 0xe43   :  { %v823_v2 = vpop.permute.xlu0 %822 }
 0xe44   :  { %v825_v5 = vadd.f32 %v823_v2, %v1755_v16 }
 0xe46   :  { %1567 = vtanh.f32 %v825_v5 }
 0xe53   :  { %v1568_v7 = vpop.eup %1567 }
 0xe54   :  { %v828_v8 = vrot.slane %v1568_v7, 2 }
 0xe56   :  { %v830_v10 = vsub.f32 %v1835_v52, %v828_v8 }
 0xe58   :  { %v832_v13 = vrot.slane %v830_v10, 6 }
 0xe5a   :  { %833 = vrot.lane.b32.xlu1 %v832_v13, %s1636_s19 }
 0xecc   :  { %v834_v14 = vpop.permute.xlu1 %833 }
 0xecd   :  { %v836_v15 = vmul.f32 %v1566_v62, %v834_v14 }
 0xecf   :  { %838 = vrot.lane.b32.xlu0 %v836_v15, %s1637_s20 }
 0xf41   :  { %v839_v17 = vpop.permute.xlu0 %838 }
 0xf42   :  { %v1857_v18 = vadd.f32 %v1568_v7, %v839_v17 }
 0xf44   :  { %874 = vrot.lane.b32.xlu1 %v1857_v18, %s1635_s2 }
 0xfb6   :  { %v875_v19 = vpop.permute.xlu1 %874 }
 0xfb7   :  { %1506 = vmatmul.mubr.msk.f32.vlgmr.msra.gmra.mxu0 %vm141_vm3, %v875_v19 }
 0xfb8   :  { %1520 = vmatpush3.msra.mxu0 %v1678_v1  ;;  %1527 = vmatprep.mubr.msk.f32.mxu0 %vm1634_vm2, %v1633_v3 }
 0xfb9   :  { %1521 = vmatprep.subr.mxu0 %v1633_v3 }
 0xfba   :  { %1522 = vmatpush3.msra.mxu0 %v1687_v4 }
 0xfbb   :  { %1523 = vmatprep.subr.mxu0 %v1633_v3 }
 0xfbc   :  { %1524 = vmatpush3.msra.mxu0 %v1697_v6 }
 0xfbd   :  { %1525 = vmatprep.subr.mxu0 %v1633_v3 }
 0xfbe   :  { %1526 = vmatpush3.msra.mxu0 %v1711_v9 }
0x1077   :  { %v944_v21 = vpop.f32.mrf.mxu0 }
0x1078   :  { %v958_v22 = vadd.f32 %v944_v21, %v1750_v12  ;;  %v949_v24 = vrot.slane %v944_v21, 6 }
0x1079   :  { %v1507_v23 = vpop.f32.mrf.mxu0 }
0x107a   :  { %v960_v1 = vrot.slane %v958_v22, 6  ;;  %v951_v25 = vadd.f32 %v949_v24, %v1755_v16 }
0x107c   :  { %961 = vrot.lane.b32.xlu0 %v960_v1, %s1635_s2  ;;  %v1380_v26 = vmul.f32 -1.442695, %v951_v25 }
0x107e   :  { %1569 = vpow2.f32 %v1380_v26 }
0x108b   :  { %v1570_v4 = vpop.eup %1569 }
0x108c   :  { %v955_v28 = vadd.f32 1.0, %v1570_v4 }
0x108e   :  { %1571 = vrcp.f32 %v955_v28 }
0x109b   :  { %v1572_v6 = vpop.eup %1571 }
0x10ee   :  { %v962_v29 = vpop.permute.xlu0 %961 }
0x10ef   :  { %v964_v3 = vmul.f32 %v1572_v6, %v962_v29 }
0x10f1   :  { %966 = vrot.lane.b32.xlu1 %v964_v3, %s1635_s2 }
0x1163   :  { %v967_v9 = vpop.permute.xlu1 %966 }
0x1164   :  { %v969_v30 = vadd.f32 %v967_v9, %v1755_v16 }
0x1166   :  { %1573 = vtanh.f32 %v969_v30 }
0x1173   :  { %v1574_v31 = vpop.eup %1573 }
0x1174   :  { %v972_v32 = vrot.slane %v1574_v31, 2 }
0x1176   :  { %v974_v33 = vsub.f32 %v1857_v18, %v972_v32 }
0x1178   :  { %v976_v34 = vrot.slane %v974_v33, 6 }
0x117a   :  { %977 = vrot.lane.b32.xlu0 %v976_v34, %s1636_s19 }
0x11ec   :  { %v978_v36 = vpop.permute.xlu0 %977 }
0x11ed   :  { %v980_v37 = vmul.f32 %v1572_v6, %v978_v36 }
0x11ef   :  { %982 = vrot.lane.b32.xlu1 %v980_v37, %s1637_s20 }
0x1261   :  { %v983_v38 = vpop.permute.xlu1 %982 }
0x1262   :  { %v1879_v39 = vadd.f32 %v1574_v31, %v983_v38 }
0x1264   :  { %v1029_v40 = vrot.slane %v1879_v39, 2 }
0x1266   :  { %1030 = vrot.lane.b32.xlu0 %v1029_v40, %s1635_s2 }
0x12d8   :  { %v1031_v41 = vpop.permute.xlu0 %1030 }
0x12d9   :  { %1517 = vmatmul.mubr.msk.f32.vlgmr.msra.gmra.mxu1 %vm141_vm3, %v1031_v41 }
0x1399   :  { %v1100_v42 = vpop.f32.mrf.mxu1 }
0x139a   :  { %v1114_v43 = vadd.f32 %v1100_v42, %v1750_v12  ;;  %v1105_v46 = vrot.slane %v1100_v42, 4 }
0x139b   :  { %v1518_v44 = vpop.f32.mrf.mxu1 }
0x139c   :  { %v1116_v45 = vrot.slane %v1114_v43, 4  ;;  %v1107_v47 = vadd.f32 %v1105_v46, %v1755_v16 }
0x139e   :  { %1117 = vrot.lane.b32.xlu1 %v1116_v45, %s1635_s2  ;;  %v1382_v48 = vmul.f32 -1.442695, %v1107_v47 }
0x13a0   :  { %1575 = vpow2.f32 %v1382_v48 }
0x13ad   :  { %v1576_v49 = vpop.eup %1575 }
0x13ae   :  { %v1111_v50 = vadd.f32 1.0, %v1576_v49 }
0x13b0   :  { %1577 = vrcp.f32 %v1111_v50 }
0x13bd   :  { %v1578_v51 = vpop.eup %1577 }
0x1410   :  { %v1118_v53 = vpop.permute.xlu1 %1117 }
0x1411   :  { %v1120_v20 = vmul.f32 %v1578_v51, %v1118_v53 }
0x1413   :  { %1122 = vrot.lane.b32.xlu0 %v1120_v20, %s1635_s2  ;;  %v1638_v20 = vmov 0  }
0x1414   :  { %1537 = vset.pattern.permute.xlu1 %v1638_v20  ;;  %1538 = vset.pattern.permute.xlu0 %v1638_v20 }
0x1485   :  { %v1123_v54 = vpop.permute.xlu0 %1122 }
0x1486   :  { %v1125_v55 = vadd.f32 %v1123_v54, %v1755_v16 }
0x1488   :  { %1579 = vtanh.f32 %v1125_v55 }
0x1495   :  { %v1580_v56 = vpop.eup %1579 }
0x1496   :  { %v1128_v57 = vrot.slane %v1580_v56, 2 }
0x1498   :  { %v1130_v59 = vsub.f32 %v1879_v39, %v1128_v57  ;;  %v1929_v57 = vstv %s139_s21 }
0x149a   :  { %v1132_v60 = vrot.slane %v1130_v59, 6 }
0x149c   :  { %1133 = vrot.lane.b32.xlu1 %v1132_v60, %s1636_s19 }
0x150e   :  { %v1134_v61 = vpop.permute.xlu1 %1133 }
0x150f   :  { %v1136_v62 = vmul.f32 %v1578_v51, %v1134_v61 }
0x1511   :  { %1138 = vrot.lane.b32.xlu0 %v1136_v62, %s1637_s20 }
0x1583   :  { %v1139_v63 = vpop.permute.xlu0 %1138 }
0x1584   :  { %v1892_v0 = vadd.f32 %v1580_v56, %v1139_v63 }
0x1586   :  { %v1185_v2 = vrot.slane %v1892_v0, 4 }
0x1588   :  { %1186 = vrot.lane.b32.xlu1 %v1185_v2, %s1635_s2 }
0x15fa   :  { %v1187_v5 = vpop.permute.xlu1 %1186 }
0x15fb   :  { %1528 = vmatmul.mubr.msk.f32.vlgmr.msra.gmra.mxu0 %vm141_vm3, %v1187_v5 }
0x16bb   :  { %v1256_v7 = vpop.f32.mrf.mxu0 }
0x16bc   :  { %v1270_v8 = vadd.f32 %v1256_v7, %v1750_v12  ;;  %v1261_v14 = vrot.slane %v1256_v7, 2 }
0x16bd   :  { %v1529_v10 = vpop.f32.mrf.mxu0 }
0x16be   :  { %v1272_v13 = vrot.slane %v1270_v8, 2  ;;  %v1263_v15 = vadd.f32 %v1261_v14, %v1755_v16 }
0x16c0   :  { %1273 = vrot.lane.b32.xlu0 %v1272_v13, %s1635_s2  ;;  %v1384_v17 = vmul.f32 -1.442695, %v1263_v15 }
0x16c2   :  { %1581 = vpow2.f32 %v1384_v17 }
0x16cf   :  { %v1582_v19 = vpop.eup %1581 }
0x16d0   :  { %v1267_v21 = vadd.f32 1.0, %v1582_v19 }
0x16d2   :  { %1583 = vrcp.f32 %v1267_v21 }
0x16df   :  { %v1584_v22 = vpop.eup %1583 }
0x1732   :  { %v1274_v23 = vpop.permute.xlu0 %1273 }
0x1733   :  { %v1276_v1 = vmul.f32 %v1584_v22, %v1274_v23 }
0x1735   :  { %1278 = vrot.lane.b32.xlu1 %v1276_v1, %s1635_s2 }
0x1739   :  { %249 = vrot.lane.b32.xlu1 %v1720_v11, %s1637_s20 }
0x17a7   :  { %v1279_v12 = vpop.permute.xlu1 %1278 }
0x17a8   :  { %v1281_v24 = vadd.f32 %v1279_v12, %v1755_v16 }
0x17aa   :  { %1585 = vtanh.f32 %v1281_v24 }
0x17ab   :  { %v250_v25 = vpop.permute.xlu1 %249 }
0x17ac   :  { %v376_v26 = vmul.f32 %v1789_v58, %v250_v25  ;;  %v532_v4 = vmul.f32 %v1812_v27, %v250_v25  ;;  %v842_v28 = vmul.f32 %v1857_v18, %v250_v25  ;;  %v1142_v11 = vmul.f32 %v1892_v0, %v250_v25 }
0x17ad   :  { %v252_v31 = vmul.f32 %v250_v25, %v1766_v35  ;;  %v689_v32 = vmul.f32 %v1835_v52, %v250_v25  ;;  %v986_v33 = vmul.f32 %v1879_v39, %v250_v25 }
0x17ae   :  { %378 = vrot.lane.b32.xlu1 %v376_v26, %s1635_s2 }
0x17b2   :  { %534 = vrot.lane.b32.xlu1 %v532_v4, %s1635_s2 }
0x17b6   :  { %844 = vrot.lane.b32.xlu1 %v842_v28, %s1635_s2 }
0x17b7   :  { %v1586_v6 = vpop.eup %1585 }
0x17b8   :  { %v1284_v29 = vrot.slane %v1586_v6, 2 }
0x17ba   :  { %1144 = vrot.lane.b32.xlu1 %v1142_v11, %s1635_s2  ;;  %v1286_v16 = vsub.f32 %v1892_v0, %v1284_v29 }
0x17bc   :  { %v1288_v3 = vrot.slane %v1286_v16, 6 }
0x17be   :  { %1289 = vrot.lane.b32.xlu0 %v1288_v3, %s1636_s19 }
0x1820   :  { %v379_v45 = vpop.permute.xlu1 %378 }
0x1821   :  { %v382_v47 = vsel %vm381_vm6, %v379_v45, 0.0 }
0x1824   :  { %v535_v46 = vpop.permute.xlu1 %534 }
0x1825   :  { %v538_v49 = vsel %vm537_vm7, %v535_v46, 0.0 }
0x1828   :  { %v845_v48 = vpop.permute.xlu1 %844 }
0x1829   :  { %v847_v50 = vsel %vm257_vm4, %v845_v48, 0.0 }
0x182c   :  { %v1145_v51 = vpop.permute.xlu1 %1144 }
0x182d   :  { %v1147_v53 = vsel %vm537_vm7, %v1145_v51, 0.0 }
0x1830   :  { %v1290_v9 = vpop.permute.xlu0 %1289 }
0x1831   :  { %v1292_v30 = vmul.f32 %v1584_v22, %v1290_v9 }
0x1833   :  { %1294 = vrot.lane.b32.xlu0 %v1292_v30, %s1637_s20 }
0x1837   :  { %254 = vrot.lane.b32.xlu0 %v252_v31, %s1635_s2 }
0x183b   :  { %691 = vrot.lane.b32.xlu0 %v689_v32, %s1635_s2 }
0x183f   :  { %988 = vrot.lane.b32.xlu0 %v986_v33, %s1635_s2 }
0x18a5   :  { %v1295_v34 = vpop.permute.xlu0 %1294 }
0x18a6   :  { %v1921_v36 = vadd.f32 %v1586_v6, %v1295_v34 }
0x18a8   :  { %v1298_v37 = vmul.f32 %v1921_v36, %v250_v25 }
0x18a9   :  { %v255_v38 = vpop.permute.xlu0 %254 }
0x18aa   :  { %1300 = vrot.lane.b32.xlu0 %v1298_v37, %s1635_s2  ;;  %v258_v40 = vsel %vm257_vm4, %v255_v38, 0.0 }
0x18ab   :  { %259 = vadd.xlane.f32.xlu1 %v258_v40 }
0x18ad   :  { %v692_v41 = vpop.permute.xlu0 %691 }
0x18ae   :  { %v695_v42 = vsel %vm694_vm5, %v692_v41, 0.0 }
0x18af   :  { %696 = vadd.xlane.f32.xlu1 %v695_v42 }
0x18b1   :  { %v989_v43 = vpop.permute.xlu0 %988 }
0x18b2   :  { %v991_v44 = vsel %vm381_vm6, %v989_v43, 0.0 }
0x18b3   :  { %992 = vadd.xlane.f32.xlu1 %v991_v44 }
0x18c9   :  { %383 = vadd.xlane.f32.xlu0 %v382_v47 }
0x18cd   :  { %539 = vadd.xlane.f32.xlu0 %v538_v49 }
0x18d1   :  { %848 = vadd.xlane.f32.xlu0 %v847_v50 }
0x18d5   :  { %1148 = vadd.xlane.f32.xlu0 %v1147_v53 }
0x191c   :  { %v1301_v54 = vpop.permute.xlu0 %1300 }
0x191d   :  { %v1303_v55 = vsel %vm694_vm5, %v1301_v54, 0.0 }
0x191e   :  { %1304 = vadd.xlane.f32.xlu0 %v1303_v55 }
0x1934   :  { %v260_v56 = vpop.xlane.xlu1 %259 }
0x1935   :  { %v262_v62 = vadd.f32 %v1929_v57, %v260_v56 }
0x1938   :  { %v697_v60 = vpop.xlane.xlu1 %696 }
0x1939   :  { %v698_v8 = vadd.f32 %v697_v60, %v1929_v57 }
0x193b   :  { %v700_v23 = vrot.slane %v698_v8, 6 }
0x193c   :  { %v993_v10 = vpop.xlane.xlu1 %992 }
0x193d   :  { %v994_v1 = vadd.f32 %v993_v10, %v1929_v57 }
0x193f   :  { %v996_v30 = vrot.slane %v994_v1, 2 }
0x1952   :  { %v384_v59 = vpop.xlane.xlu0 %383 }
0x1953   :  { %v385_v61 = vadd.f32 %v384_v59, %v1929_v57 }
0x1955   :  { %v387_v63 = vrot.slane %v385_v61, 2 }
0x1956   :  { %v540_v2 = vpop.xlane.xlu0 %539 }
0x1957   :  { %v389_v5 = vmax.f32 %v262_v62, %v387_v63  ;;  %v541_v7 = vadd.f32 %v540_v2, %v1929_v57 }
0x1959   :  { %v390_v13 = vsub.f32 %v262_v62, %v389_v5  ;;  %v394_v14 = vrot.slane %v389_v5, 6  ;;  %v543_v15 = vrot.slane %v541_v7, 4 }
0x195a   :  { %v849_v17 = vpop.xlane.xlu0 %848 }
0x195b   :  { %v391_v19 = vmul.f32 1.442695, %v390_v13  ;;  %v396_v21 = vsub.f32 %v385_v61, %v394_v14  ;;  %v545_v22 = vmax.f32 %v389_v5, %v543_v15  ;;  %v850_v4 = vadd.f32 %v849_v17, %v1929_v57 }
0x195d   :  { %1587 = vpow2.f32 %v391_v19  ;;  %v397_v12 = vmul.f32 1.442695, %v396_v21  ;;  %v546_v24 = vsub.f32 %v389_v5, %v545_v22  ;;  %v550_v25 = vrot.slane %v545_v22, 4 }
0x195e   :  { %v702_v26 = vmax.f32 %v545_v22, %v700_v23  ;;  %v1149_v28 = vpop.xlane.xlu0 %1148 }
0x195f   :  { %1589 = vpow2.f32 %v397_v12  ;;  %v547_v6 = vmul.f32 1.442695, %v546_v24  ;;  %v552_v11 = vsub.f32 %v541_v7, %v550_v25  ;;  %v1150_v29 = vadd.f32 %v1149_v28, %v1929_v57 }
0x1960   :  { %v703_v16 = vsub.f32 %v545_v22, %v702_v26  ;;  %v707_v3 = vrot.slane %v702_v26, 2  ;;  %v851_v9 = vmax.f32 %v702_v26, %v850_v4 }
0x1961   :  { %1591 = vpow2.f32 %v547_v6  ;;  %v553_v31 = vmul.f32 1.442695, %v552_v11  ;;  %v1152_v32 = vrot.slane %v1150_v29, 4 }
0x1962   :  { %v709_v33 = vsub.f32 %v698_v8, %v707_v3  ;;  %v704_v34 = vmul.f32 1.442695, %v703_v16  ;;  %v852_v37 = vsub.f32 %v702_v26, %v851_v9  ;;  %v998_v38 = vmax.f32 %v851_v9, %v996_v30 }
0x1963   :  { %1593 = vpow2.f32 %v553_v31  ;;  %v855_v41 = vsub.f32 %v850_v4, %v851_v9 }
0x1964   :  { %v710_v40 = vmul.f32 1.442695, %v709_v33  ;;  %v1003_v42 = vrot.slane %v998_v38, 6  ;;  %v1938_v43 = vmax.f32 %v998_v38, %v1152_v32  ;;  %v853_v44 = vmul.f32 1.442695, %v852_v37 }
0x1965   :  { %v999_v45 = vsub.f32 %v851_v9, %v998_v38  ;;  %v856_v47 = vmul.f32 1.442695, %v855_v41 }
0x1966   :  { %1595 = vpow2.f32 %v710_v40  ;;  %v1005_v46 = vsub.f32 %v994_v1, %v1003_v42  ;;  %v1159_v48 = vrot.slane %v1938_v43, 4  ;;  %v1155_v20 = vsub.f32 %v998_v38, %v1938_v43 }
0x1967   :  { %1597 = vpow2.f32 %v704_v34  ;;  %v1000_v53 = vmul.f32 1.442695, %v999_v45 }
0x1968   :  { %v1006_v49 = vmul.f32 1.442695, %v1005_v46  ;;  %v1161_v51 = vsub.f32 %v1150_v29, %v1159_v48  ;;  %1599 = vpow2.f32 %v853_v44  ;;  %v1156_v61 = vmul.f32 1.442695, %v1155_v20 }
0x1969   :  { %1601 = vpow2.f32 %v856_v47 }
0x196a   :  { %v1588_v50 = vpop.eup %1587  ;;  %v1162_v55 = vmul.f32 1.442695, %v1161_v51  ;;  %1603 = vpow2.f32 %v1006_v49 }
0x196b   :  { %405 = vperm.xlu1 %1537, %v1588_v50  }
0x196c   :  { %v1590_v54 = vpop.eup %1589  ;;  %1605 = vpow2.f32 %v1162_v55 }
0x196d   :  { %v400_v56 = vrot.slane %v1590_v54, 2  ;;  %410 = vperm.xlu0 %1538, %v1590_v54   ;;  %1607 = vpow2.f32 %v1000_v53 }
0x196e   :  { %v1592_v59 = vpop.eup %1591  ;;  %1609 = vpow2.f32 %v1156_v61 }
0x196f   :  { %v402_v60 = vadd.f32 %v1588_v50, %v400_v56  ;;  %562 = vperm.xlu1 %1537, %v1592_v59  }
0x1970   :  { %v1594_v62 = vpop.eup %1593 }
0x1971   :  { %v555_v63 = vmul.f32 %v1592_v59, %v402_v60  ;;  %v557_v2 = vrot.slane %v1594_v62, 4 }
0x1973   :  { %v1596_v5 = vpop.eup %1595  ;;  %v559_v7 = vadd.f32 %v557_v2, %v555_v63  ;;  %567 = vperm.xlu1 %1537, %v1594_v62  }
0x1974   :  { %v1598_v8 = vpop.eup %1597  ;;  %v714_v13 = vrot.slane %v1596_v5, 6 }
0x1975   :  { %v712_v10 = vmul.f32 %v1598_v8, %v559_v7  ;;  %v1600_v15 = vpop.eup %1599 }
0x1976   :  { %v1602_v17 = vpop.eup %1601 }
0x1977   :  { %719 = vperm.xlu1 %1537, %v1598_v8   ;;  %v716_v14 = vadd.f32 %v714_v13, %v712_v10  ;;  %v1604_v21 = vpop.eup %1603 }
0x1978   :  { %v1010_v24 = vrot.slane %v1604_v21, 2 }
0x1979   :  { %v858_v19 = vmul.f32 %v1600_v15, %v716_v14  ;;  %v1606_v22 = vpop.eup %1605 }
0x197a   :  { %v1608_v1 = vpop.eup %1607  ;;  %1176 = vperm.xlu0 %1538, %v1606_v22   ;;  %v1166_v28 = vrot.slane %v1606_v22, 4 }
0x197b   :  { %724 = vperm.xlu1 %1537, %v1596_v5   ;;  %v859_v23 = vadd.f32 %v1602_v17, %v858_v19  ;;  %v1610_v26 = vpop.eup %1609 }
0x197d   :  { %v1008_v12 = vmul.f32 %v1608_v1, %v859_v23 }
0x197f   :  { %862 = vperm.xlu1 %1537, %v1600_v15   ;;  %v1012_v25 = vadd.f32 %v1010_v24, %v1008_v12 }
0x1981   :  { %v1164_v4 = vmul.f32 %v1610_v26, %v1012_v25 }
0x1983   :  { %868 = vperm.xlu1 %1537, %v1602_v17   ;;  %v1168_v6 = vadd.f32 %v1166_v28, %v1164_v4 }
0x1987   :  { %1015 = vperm.xlu1 %1537, %v1608_v1  }
0x198b   :  { %1020 = vperm.xlu1 %1537, %v1604_v21  }
0x198f   :  { %1171 = vperm.xlu1 %1537, %v1610_v26   ;;  %v1617_v26 = vld [vmem:[%s1964_s3 + $0x1] ss:$0 sm:$0xff] }
0x19a7   :  { %v1305_v11 = vpop.xlane.xlu0 %1304 }
0x19a8   :  { %v1306_v29 = vadd.f32 %v1305_v11, %v1929_v57 }
0x19aa   :  { %v1308_v16 = vrot.slane %v1306_v29, 6 }
0x19ac   :  { %v1310_v3 = vmax.f32 %v1938_v43, %v1308_v16 }
0x19ae   :  { %v1311_v9 = vsub.f32 %v1938_v43, %v1310_v3  ;;  %v1315_v30 = vrot.slane %v1310_v3, 2 }
0x19b0   :  { %v1312_v31 = vmul.f32 1.442695, %v1311_v9  ;;  %v1317_v32 = vsub.f32 %v1306_v29, %v1315_v30 }
0x19b2   :  { %1611 = vpow2.f32 %v1312_v31  ;;  %v1318_v33 = vmul.f32 1.442695, %v1317_v32 }
0x19b4   :  { %1613 = vpow2.f32 %v1318_v33 }
0x19bf   :  { %v1612_v34 = vpop.eup %1611 }
0x19c0   :  { %1327 = vperm.xlu1 %1537, %v1612_v34   ;;  %v1320_v38 = vmul.f32 %v1612_v34, %v1168_v6 }
0x19c1   :  { %v1614_v37 = vpop.eup %1613 }
0x19c2   :  { %v1322_v40 = vrot.slane %v1614_v37, 6 }
0x19c4   :  { %1332 = vperm.xlu1 %1537, %v1614_v37   ;;  %v1324_v41 = vadd.f32 %v1322_v40, %v1320_v38 }
0x19c6   :  { %1342 = vperm.xlu0 %1538, %v1324_v41  }
0x19e6   :  { %v406_v57 = vpop.permute.xlu1 %405 }
0x19e7   :  { %v408_v51 = vmul.f32 %v406_v57, %v1766_v35 }
0x19e8   :  { %v411_v43 = vpop.permute.xlu0 %410 }
0x19e9   :  { %v413_v48 = vmul.f32 %v411_v43, %v1789_v58 }
0x19ea   :  { %v563_v42 = vpop.permute.xlu1 %562 }
0x19eb   :  { %v415_v49 = vrot.slane %v413_v48, 2 }
0x19ed   :  { %v417_v20 = vadd.f32 %v415_v49, %v408_v51 }
0x19ee   :  { %v568_v44 = vpop.permute.xlu1 %567 }
0x19ef   :  { %v570_v53 = vmul.f32 %v568_v44, %v1812_v27  ;;  %v565_v56 = vmul.f32 %v563_v42, %v417_v20 }
0x19f1   :  { %v572_v54 = vrot.slane %v570_v53, 4 }
0x19f2   :  { %v720_v45 = vpop.permute.xlu1 %719 }
0x19f3   :  { %v574_v60 = vadd.f32 %v572_v54, %v565_v56 }
0x19f5   :  { %v722_v63 = vmul.f32 %v720_v45, %v574_v60  ;;  %v1177_v10 = vpop.permute.xlu0 %1176 }
0x19f6   :  { %v725_v46 = vpop.permute.xlu1 %724  ;;  %v1179_v19 = vmul.f32 %v1177_v10, %v1892_v0 }
0x19f7   :  { %v727_v59 = vmul.f32 %v725_v46, %v1835_v52 }
0x19f8   :  { %v1181_v23 = vrot.slane %v1179_v19, 4 }
0x19f9   :  { %v729_v61 = vrot.slane %v727_v59, 6 }
0x19fa   :  { %v863_v47 = vpop.permute.xlu1 %862 }
0x19fb   :  { %v731_v2 = vadd.f32 %v729_v61, %v722_v63 }
0x19fd   :  { %v865_v7 = vmul.f32 %v863_v47, %v731_v2 }
0x19fe   :  { %v869_v50 = vpop.permute.xlu1 %868 }
0x19ff   :  { %v871_v5 = vmul.f32 %v869_v50, %v1857_v18 }
0x1a01   :  { %v872_v35 = vadd.f32 %v871_v5, %v865_v7 }
0x1a02   :  { %v1016_v55 = vpop.permute.xlu1 %1015 }
0x1a03   :  { %v1018_v14 = vmul.f32 %v1016_v55, %v872_v35 }
0x1a06   :  { %v1021_v62 = vpop.permute.xlu1 %1020 }
0x1a07   :  { %v1023_v8 = vmul.f32 %v1021_v62, %v1879_v39 }
0x1a09   :  { %v1025_v13 = vrot.slane %v1023_v8, 2 }
0x1a0a   :  { %v1172_v58 = vpop.permute.xlu1 %1171 }
0x1a0b   :  { %v1027_v17 = vadd.f32 %v1025_v13, %v1018_v14 }
0x1a0d   :  { %v1174_v21 = vmul.f32 %v1172_v58, %v1027_v17 }
0x1a0f   :  { %v1183_v18 = vadd.f32 %v1181_v23, %v1174_v21 }
0x1a3b   :  { %v1328_v27 = vpop.permute.xlu1 %1327 }
0x1a3c   :  { %v1330_v12 = vmul.f32 %v1328_v27, %v1183_v18 }
0x1a3f   :  { %v1333_v52 = vpop.permute.xlu1 %1332 }
0x1a40   :  { %v1335_v22 = vmul.f32 %v1333_v52, %v1921_v36  ;;  %v1355_v36 = vstv %s1369_s24 }
0x1a41   :  { %v1343_v15 = vpop.permute.xlu0 %1342 }
0x1a42   :  { %1615 = vrcp.f32 %v1343_v15  ;;  %v1337_v1 = vrot.slane %v1335_v22, 6 }
0x1a44   :  { %v1339_v24 = vadd.f32 %v1337_v1, %v1330_v12 }
0x1a4f   :  { %v1616_v39 = vpop.eup %1615 }
0x1a50   :  { %v1346_v25 = vmul.f32 %v1616_v39, %v1339_v24 }
0x1a52   :  { %v1347_v4 = vmul.f32 %v1617_v26, %v1346_v25 }
0x1a54   :  { %1349 = vrot.lane.b32.xlu0 %v1347_v4, %s1635_s2 }
0x1ac6   :  { %v1350_v28 = vpop.permute.xlu0 %1349 }
0x1ac7   :  { %v1352_v0 = vsel %vm257_vm4, %v1350_v28, 0.0 }
0x1ac8   :  { %1353 = vadd.xlane.f32.xlu1 %v1352_v0 }
0x1b51   :  { %v1354_v6 = vpop.xlane.xlu1 %1353 }
0x1b52   :  { %v1356_v11 = vadd.f32 %v1355_v36, %v1354_v6 }
0x1b54   :  { %1358 = vst.msk [vmem:[%s1966_s5] sm:$0x3] %vm1357_vm8, %v1356_v11 }
0x1b55   :  { %1363 = vsyncpa [#allocation3], 1 }

</bundles_post_ra>
